<compile_context>
chip_gen: v6e
topology: v6e:2x2x1
jax: 0.10.0
libtpu: 0.0.40
codegen_flags: <defaults>
</compile_context>

<pallas_src>
import functools

import jax
import jax.numpy as jnp
from jax.experimental import pallas as pl
from jax.experimental.pallas import tpu as pltpu

TEMPERATURE = 0.07
BASE_TEMPERATURE = 0.07


def _supcon_tile_kernel(feat_ref, keys_ref, lab_col_ref, lab_row_ref,   # inputs
                        out_ref,                                         # output
                        q_scr, denom_acc, s1_acc, s2_acc,                # VMEM scratch
                        *, inv_temp, pad_cols, keys_resident):
    i = pl.program_id(0)          # row (anchor) tile
    j = pl.program_id(1)          # col (key) tile -- reduction axis (last)

    @pl.when(j == 0)
    def _init():
        # Temperature fold hoisted out of the j loop: scale the (tile, D) anchor block
        # once per row tile, in native dtype, and reuse it for every key tile.
        q_scr[...] = feat_ref[...] * inv_temp
        # Padded key columns come from zero feature rows, so each contributes exactly
        # exp(0) = 1 to the denominator -> start the accumulator at -(b_pad - B)
        # instead of masking every (tile, tile) block.
        denom_acc[...] = jnp.full(denom_acc.shape, -float(pad_cols), jnp.float32)
        s1_acc[...] = jnp.zeros_like(s1_acc)
        s2_acc[...] = jnp.zeros_like(s2_acc)

    kt = keys_ref[j] if keys_resident else keys_ref[0]        # (D, tile) key block
    logits = jnp.dot(q_scr[...], kt,
                     preferred_element_type=jnp.float32)      # (tile, tile) f32
    # NOTE: no row-max subtraction before exp -- mirrors the PyTorch module.
    e = jnp.exp(logits)

    lab_r = lab_row_ref[...].astype(jnp.float32)              # (1, tile) key labels

    # pos = lab_col * lab_row is rank-1: accumulate lab_row-weighted / label-free
    # partials only; the lab_col factor is applied once per row at finalize.
    denom_acc[...] += jnp.sum(e, axis=1, keepdims=True)
    s1_acc[...] += jnp.sum(logits * lab_r, axis=1, keepdims=True)
    s2_acc[...] += jnp.sum(lab_r, axis=1, keepdims=True)

    @pl.when(i == j)
    def _self_exclude():
        # Only block-diagonal tiles contain self pairs.  Per-row corrections are
        # e[r,r] and lab[r] * logits[r,r] (on the raw s1 partial); the lab[r]^2 term
        # of S2 is handled algebraically at finalize.  Extracting the diagonal from
        # the SAME e / logits used above makes the subtraction exact.
        t = logits.shape[0]
        rr = jax.lax.broadcasted_iota(jnp.int32, (t, t), 0)
        cc = jax.lax.broadcasted_iota(jnp.int32, (t, t), 1)
        diag = rr == cc
        lab_c = lab_col_ref[...].astype(jnp.float32)           # (tile, 1) anchor labels
        denom_acc[...] -= jnp.sum(jnp.where(diag, e, 0.0), axis=1, keepdims=True)
        diag_logit = jnp.sum(jnp.where(diag, logits, 0.0), axis=1, keepdims=True)
        s1_acc[...] -= lab_c * diag_logit

    @pl.when(j == pl.num_programs(1) - 1)
    def _finalize():
        lab_c = lab_col_ref[...].astype(jnp.float32)           # (tile, 1)
        s1 = lab_c * s1_acc[...]
        s2 = lab_c * (s2_acc[...] - lab_c)                     # removes self pair lab_c^2
        # sum_c(-pos * (logit - log(denom + eps))) = -(S1 - S2 * log(denom + eps))
        num = -(s1 - s2 * jnp.log(denom_acc[...] + 1e-12))
        out_ref[...] = num * pl.reciprocal(s2 + 1e-12, approx=True)


def _tpu_kind():
    try:
        return jax.devices()[0].device_kind.lower()
    except Exception:
        return ""


def supcon_loss(features, labels, temperature=TEMPERATURE,
                base_temperature=BASE_TEMPERATURE, tile=None, resident_keys=None):
    """features: (B, D) float, labels: (B,) non-negative scalars. Returns scalar loss."""
    B, D = features.shape
    kind = _tpu_kind()

    if tile is None:
        # 256 fills the 2x256^2 MXU and halves key passes on v6e/v7x; v5e's MXU is
        # 4x128^2 with a single vst slot, so 128 keeps (tile,tile) temporaries small.
        tile = 256 if ("v6" in kind or "v7" in kind) else 128

    n_t = pl.cdiv(B, tile)
    b_pad = n_t * tile
    itemsize = jnp.dtype(features.dtype).itemsize

    f = features
    lab = labels.astype(jnp.float32).reshape(B)
    if b_pad != B:
        f = jnp.pad(f, ((0, b_pad - B), (0, 0)))   # zero-fill invariant used in-kernel
        lab = jnp.pad(lab, (0, b_pad - B))

    # Keys as (n_t, D, tile): pre-transposed per-tile [K, N] MXU operands; the leading
    # tile index makes the resident path a simple dynamic first-axis read in-kernel.
    keys_tiled = jnp.transpose(f.reshape(n_t, tile, D), (0, 2, 1))
    lab_col = lab.reshape(b_pad, 1)
    lab_row = lab.reshape(1, b_pad)

    keys_bytes = b_pad * D * itemsize
    if resident_keys is None:
        # Make the full key matrix VMEM-resident (one DMA instead of n_t re-reads)
        # when it comfortably fits; threshold halved on v7x's 64 MiB VMEM.
        budget = (16 << 20) if "v6" in kind else ((8 << 20) if "v7" in kind else (4 << 20))
        resident_keys = keys_bytes <= budget
    resident_keys = bool(resident_keys)

    if resident_keys:
        keys_spec = pl.BlockSpec((n_t, D, tile), lambda i, j: (0, 0, 0))
    else:
        keys_spec = pl.BlockSpec((1, D, tile), lambda i, j: (j, 0, 0))

    # Only raise the scoped-VMEM limit when the working set might exceed defaults.
    est = (2 * tile * D * itemsize                                     # anchor blocks
           + (2 * keys_bytes if resident_keys else 2 * tile * D * itemsize)
           + tile * D * itemsize                                       # q scratch
           + 3 * tile * tile * 4                                       # logits/e working set
           + 16 * tile * 4)                                            # small accs/labels/out
    vmem_limit = None
    if est > (12 << 20):
        vmem_limit = int(min(max(2 * est, 32 << 20), 48 << 20))

    kernel = functools.partial(
        _supcon_tile_kernel,
        inv_temp=1.0 / float(temperature),
        pad_cols=b_pad - B,
        keys_resident=resident_keys)

    per_row = pl.pallas_call(
        kernel,
        out_shape=jax.ShapeDtypeStruct((b_pad, 1), jnp.float32),
        grid_spec=pltpu.PrefetchScalarGridSpec(
            num_scalar_prefetch=0,
            grid=(n_t, n_t),
            in_specs=[
                pl.BlockSpec((tile, D), lambda i, j: (i, 0)),   # anchor rows
                keys_spec,                                       # key tiles (resident/streamed)
                pl.BlockSpec((tile, 1), lambda i, j: (i, 0)),   # anchor labels (column view)
                pl.BlockSpec((1, tile), lambda i, j: (0, j)),   # key labels (row view)
            ],
            out_specs=pl.BlockSpec((tile, 1), lambda i, j: (i, 0)),
            scratch_shapes=[
                pltpu.VMEM((tile, D), features.dtype),   # temperature-scaled anchor block
                pltpu.VMEM((tile, 1), jnp.float32),      # denom partial
                pltpu.VMEM((tile, 1), jnp.float32),      # s1 partial (lab_row-weighted logits)
                pltpu.VMEM((1, 1), jnp.float32),         # s2 partial (sum of key labels)
            ]),
        compiler_params=pltpu.CompilerParams(
            dimension_semantics=("parallel", "arbitrary"),
            vmem_limit_bytes=vmem_limit),
    )(f, keys_tiled, lab_col, lab_row)

    # O(B) epilogue in plain JAX: drop padded rows, mean over anchors, temperature rescale.
    loss = jnp.mean(per_row[:B, 0]) * (float(temperature) / float(base_temperature))
    return loss


def _reference_supcon(features, labels, temperature=TEMPERATURE,
                      base_temperature=BASE_TEMPERATURE):
    # Plain-JAX reference mirroring the PyTorch module, for verification.
    B = features.shape[0]
    f = features.astype(jnp.float32)
    lab = labels.reshape(B, 1).astype(jnp.float32)
    not_diag = 1.0 - jnp.eye(B, dtype=jnp.float32)
    mask = lab.T * lab * not_diag
    logits = (f @ f.T) / temperature
    exp_logits = jnp.exp(logits) * not_diag
    log_proba = logits - jnp.log(exp_logits.sum(axis=1, keepdims=True) + 1e-12)
    loss = (-mask * log_proba).sum(axis=1) / (mask.sum(axis=1) + 1e-12)
    return loss.mean() * (temperature / base_temperature)


if __name__ == "__main__":
    key = jax.random.PRNGKey(0)
    kf, kl, kf2, kl2 = jax.random.split(key, 4)

    # Small shape (sub-tile: exercises the constant padded-column denominator correction).
    B, D = 8, 32
    feats = jax.random.normal(kf, (B, D), dtype=jnp.float32)
    feats = feats / jnp.linalg.norm(feats, axis=1, keepdims=True)   # SupCon-style L2 norm
    labels = jax.random.randint(kl, (B,), 1, 3).astype(jnp.float32)

    loss = jax.block_until_ready(supcon_loss(feats, labels))
    ref = _reference_supcon(feats, labels)
    assert jnp.allclose(loss, ref, rtol=2e-3, atol=1e-5), (loss, ref)

    # Multi-tile grid (2x2 tiles of 128: ragged last tile, diag + off-diag tiles),
    # resident-keys path.
    B2, D2 = 200, 32
    feats2 = jax.random.normal(kf2, (B2, D2), dtype=jnp.float32)
    feats2 = feats2 / jnp.linalg.norm(feats2, axis=1, keepdims=True)
    labels2 = jax.random.randint(kl2, (B2,), 1, 4).astype(jnp.float32)

    ref2 = _reference_supcon(feats2, labels2)
    loss2 = jax.block_until_ready(
        supcon_loss(feats2, labels2, tile=128, resident_keys=True))
    assert jnp.allclose(loss2, ref2, rtol=2e-3, atol=1e-5), (loss2, ref2)

    # Same shape through the streamed-keys (non-resident) fallback path.
    loss3 = jax.block_until_ready(
        supcon_loss(feats2, labels2, tile=128, resident_keys=False))
    assert jnp.allclose(loss3, ref2, rtol=2e-3, atol=1e-5), (loss3, ref2)

    print("KERNEL_OK")
</pallas_src>

<mosaic_0001>
module attributes {stable_mosaic.version = 11 : i64} {
  func.func @_supcon_tile_kernel(%arg0: i32, %arg1: i32, %arg2: memref<128x32xf32, #tpu.memory_space<vmem>>, %arg3: memref<1x32x128xf32, #tpu.memory_space<vmem>>, %arg4: memref<128x1xf32, #tpu.memory_space<vmem>>, %arg5: memref<1x128xf32, #tpu.memory_space<vmem>>, %arg6: memref<128x1xf32, #tpu.memory_space<vmem>>, %arg7: memref<128x32xf32, #tpu.memory_space<vmem>>, %arg8: memref<128x1xf32, #tpu.memory_space<vmem>>, %arg9: memref<128x1xf32, #tpu.memory_space<vmem>>, %arg10: memref<1x1xf32, #tpu.memory_space<vmem>>) attributes {dimension_semantics = [#tpu.dimension_semantics<parallel>, #tpu.dimension_semantics<arbitrary>], iteration_bounds = array<i64: 1, 1>, scalar_prefetch = 0 : i64, scratch_operands = 4 : i64, tpu.core_type = #tpu.core_type<tc>, window_params = [{transform_indices = @transform_0, window_bounds = array<i64: 128, 32>}, {pipeline_mode = #tpu.pipeline_mode<synchronous>, transform_indices = @transform_1, window_bounds = array<i64: 1, 32, 128>}, {transform_indices = @transform_2, window_bounds = array<i64: 128, 1>}, {transform_indices = @transform_3, window_bounds = array<i64: 1, 128>}, {transform_indices = @transform_4, window_bounds = array<i64: 128, 1>}]} {
    %c0_i32 = arith.constant 0 : i32
    %0 = arith.cmpi eq, %arg1, %c0_i32 : i32
    %1 = arith.extui %0 : i1 to i32
    %c0_i32_0 = arith.constant 0 : i32
    %2 = arith.cmpi ne, %1, %c0_i32_0 : i32
    scf.if %2 {
      %c0_24 = arith.constant 0 : index
      %c0_25 = arith.constant 0 : index
      %33 = vector.load %arg2[%c0_24, %c0_25] : memref<128x32xf32, #tpu.memory_space<vmem>>, vector<128x32xf32>
      %cst_26 = arith.constant 14.2857141 : f32
      %34 = vector.broadcast %cst_26 : f32 to vector<128x32xf32>
      %35 = arith.mulf %33, %34 : vector<128x32xf32>
      %c0_27 = arith.constant 0 : index
      %c0_28 = arith.constant 0 : index
      %36 = vector.load %arg7[%c0_27, %c0_28] : memref<128x32xf32, #tpu.memory_space<vmem>>, vector<128x32xf32>
      tpu.vector_store %arg7[%c0_27, %c0_28], %35 {strides = array<i32>} : memref<128x32xf32, #tpu.memory_space<vmem>>, vector<128x32xf32>,
      %cst_29 = arith.constant -1.200000e+02 : f32
      %37 = vector.broadcast %cst_29 : f32 to vector<128x1xf32>
      %c0_30 = arith.constant 0 : index
      %c0_31 = arith.constant 0 : index
      %38 = vector.load %arg8[%c0_30, %c0_31] : memref<128x1xf32, #tpu.memory_space<vmem>>, vector<128x1xf32>
      tpu.vector_store %arg8[%c0_30, %c0_31], %37 {strides = array<i32>} : memref<128x1xf32, #tpu.memory_space<vmem>>, vector<128x1xf32>,
      %cst_32 = arith.constant 0.000000e+00 : f32
      %39 = vector.broadcast %cst_32 : f32 to vector<128x1xf32>
      %c0_33 = arith.constant 0 : index
      %c0_34 = arith.constant 0 : index
      %40 = vector.load %arg9[%c0_33, %c0_34] : memref<128x1xf32, #tpu.memory_space<vmem>>, vector<128x1xf32>
      tpu.vector_store %arg9[%c0_33, %c0_34], %39 {strides = array<i32>} : memref<128x1xf32, #tpu.memory_space<vmem>>, vector<128x1xf32>,
      %cst_35 = arith.constant 0.000000e+00 : f32
      %41 = vector.broadcast %cst_35 : f32 to vector<1x1xf32>
      %c0_36 = arith.constant 0 : index
      %c0_37 = arith.constant 0 : index
      %42 = vector.load %arg10[%c0_36, %c0_37] : memref<1x1xf32, #tpu.memory_space<vmem>>, vector<1x1xf32>
      tpu.vector_store %arg10[%c0_36, %c0_37], %41 {strides = array<i32>} : memref<1x1xf32, #tpu.memory_space<vmem>>, vector<1x1xf32>,
    } else {
    }
    %3 = arith.index_cast %arg1 : i32 to index
    %c0 = arith.constant 0 : index
    %c0_1 = arith.constant 0 : index
    %4 = vector.load %arg3[%3, %c0, %c0_1] : memref<1x32x128xf32, #tpu.memory_space<vmem>>, vector<1x32x128xf32>
    %5 = vector.shape_cast %4 : vector<1x32x128xf32> to vector<32x128xf32>
    %c0_2 = arith.constant 0 : index
    %c0_3 = arith.constant 0 : index
    %6 = vector.load %arg7[%c0_2, %c0_3] : memref<128x32xf32, #tpu.memory_space<vmem>>, vector<128x32xf32>
    %cst = arith.constant dense<0.000000e+00> : vector<128x128xf32>
    %7 = tpu.matmul %6, %5, %cst {dimension_numbers = #tpu.dot_dimension_numbers<[1], [0], [0], [1], [0, 0, 1, 1], [], []>} : vector<128x32xf32>, vector<32x128xf32>, vector<128x128xf32> -> vector<128x128xf32>
    %8 = math.exp %7 : vector<128x128xf32>
    %c0_4 = arith.constant 0 : index
    %c0_5 = arith.constant 0 : index
    %9 = vector.load %arg5[%c0_4, %c0_5] : memref<1x128xf32, #tpu.memory_space<vmem>>, vector<1x128xf32>
    %c0_6 = arith.constant 0 : index
    %c0_7 = arith.constant 0 : index
    %10 = vector.load %arg8[%c0_6, %c0_7] : memref<128x1xf32, #tpu.memory_space<vmem>>, vector<128x1xf32>
    %cst_8 = arith.constant dense<0.000000e+00> : vector<128xf32>
    %11 = vector.multi_reduction <add>, %8, %cst_8 [1] : vector<128x128xf32> to vector<128xf32>
    %12 = vector.shape_cast %11 : vector<128xf32> to vector<128x1xf32>
    %13 = arith.addf %10, %12 : vector<128x1xf32>
    %c0_9 = arith.constant 0 : index
    %c0_10 = arith.constant 0 : index
    %14 = vector.load %arg8[%c0_9, %c0_10] : memref<128x1xf32, #tpu.memory_space<vmem>>, vector<128x1xf32>
    tpu.vector_store %arg8[%c0_9, %c0_10], %13 {strides = array<i32>} : memref<128x1xf32, #tpu.memory_space<vmem>>, vector<128x1xf32>,
    %c0_11 = arith.constant 0 : index
    %c0_12 = arith.constant 0 : index
    %15 = vector.load %arg9[%c0_11, %c0_12] : memref<128x1xf32, #tpu.memory_space<vmem>>, vector<128x1xf32>
    %16 = vector.broadcast %9 : vector<1x128xf32> to vector<128x128xf32>
    %17 = arith.mulf %7, %16 : vector<128x128xf32>
    %cst_13 = arith.constant dense<0.000000e+00> : vector<128xf32>
    %18 = vector.multi_reduction <add>, %17, %cst_13 [1] : vector<128x128xf32> to vector<128xf32>
    %19 = vector.shape_cast %18 : vector<128xf32> to vector<128x1xf32>
    %20 = arith.addf %15, %19 : vector<128x1xf32>
    %c0_14 = arith.constant 0 : index
    %c0_15 = arith.constant 0 : index
    %21 = vector.load %arg9[%c0_14, %c0_15] : memref<128x1xf32, #tpu.memory_space<vmem>>, vector<128x1xf32>
    tpu.vector_store %arg9[%c0_14, %c0_15], %20 {strides = array<i32>} : memref<128x1xf32, #tpu.memory_space<vmem>>, vector<128x1xf32>,
    %c0_16 = arith.constant 0 : index
    %c0_17 = arith.constant 0 : index
    %22 = vector.load %arg10[%c0_16, %c0_17] : memref<1x1xf32, #tpu.memory_space<vmem>>, vector<1x1xf32>
    %cst_18 = arith.constant dense<0.000000e+00> : vector<1xf32>
    %23 = vector.multi_reduction <add>, %9, %cst_18 [1] : vector<1x128xf32> to vector<1xf32>
    %24 = vector.shape_cast %23 : vector<1xf32> to vector<1x1xf32>
    %25 = arith.addf %22, %24 : vector<1x1xf32>
    %c0_19 = arith.constant 0 : index
    %c0_20 = arith.constant 0 : index
    %26 = vector.load %arg10[%c0_19, %c0_20] : memref<1x1xf32, #tpu.memory_space<vmem>>, vector<1x1xf32>
    tpu.vector_store %arg10[%c0_19, %c0_20], %25 {strides = array<i32>} : memref<1x1xf32, #tpu.memory_space<vmem>>, vector<1x1xf32>,
    %27 = arith.cmpi eq, %arg0, %arg1 : i32
    %28 = arith.extui %27 : i1 to i32
    %c0_i32_21 = arith.constant 0 : i32
    %29 = arith.cmpi ne, %28, %c0_i32_21 : i32
    scf.if %29 {
      %33 = tpu.iota {dimensions = array<i32: 0>} : vector<128x128xi32>
      %34 = tpu.iota {dimensions = array<i32: 1>} : vector<128x128xi32>
      %35 = arith.cmpi eq, %33, %34 : vector<128x128xi32>
      %c0_24 = arith.constant 0 : index
      %c0_25 = arith.constant 0 : index
      %36 = vector.load %arg4[%c0_24, %c0_25] : memref<128x1xf32, #tpu.memory_space<vmem>>, vector<128x1xf32>
      %c0_26 = arith.constant 0 : index
      %c0_27 = arith.constant 0 : index
      %37 = vector.load %arg8[%c0_26, %c0_27] : memref<128x1xf32, #tpu.memory_space<vmem>>, vector<128x1xf32>
      %cst_28 = arith.constant 0.000000e+00 : f32
      %38 = vector.broadcast %cst_28 : f32 to vector<128x128xf32>
      %39 = arith.select %35, %8, %38 : vector<128x128xi1>, vector<128x128xf32>
      %cst_29 = arith.constant dense<0.000000e+00> : vector<128xf32>
      %40 = vector.multi_reduction <add>, %39, %cst_29 [1] : vector<128x128xf32> to vector<128xf32>
      %41 = vector.shape_cast %40 : vector<128xf32> to vector<128x1xf32>
      %42 = arith.subf %37, %41 : vector<128x1xf32>
      %c0_30 = arith.constant 0 : index
      %c0_31 = arith.constant 0 : index
      %43 = vector.load %arg8[%c0_30, %c0_31] : memref<128x1xf32, #tpu.memory_space<vmem>>, vector<128x1xf32>
      tpu.vector_store %arg8[%c0_30, %c0_31], %42 {strides = array<i32>} : memref<128x1xf32, #tpu.memory_space<vmem>>, vector<128x1xf32>,
      %cst_32 = arith.constant 0.000000e+00 : f32
      %44 = vector.broadcast %cst_32 : f32 to vector<128x128xf32>
      %45 = arith.select %35, %7, %44 : vector<128x128xi1>, vector<128x128xf32>
      %cst_33 = arith.constant dense<0.000000e+00> : vector<128xf32>
      %46 = vector.multi_reduction <add>, %45, %cst_33 [1] : vector<128x128xf32> to vector<128xf32>
      %47 = vector.shape_cast %46 : vector<128xf32> to vector<128x1xf32>
      %c0_34 = arith.constant 0 : index
      %c0_35 = arith.constant 0 : index
      %48 = vector.load %arg9[%c0_34, %c0_35] : memref<128x1xf32, #tpu.memory_space<vmem>>, vector<128x1xf32>
      %49 = arith.mulf %36, %47 : vector<128x1xf32>
      %50 = arith.subf %48, %49 : vector<128x1xf32>
      %c0_36 = arith.constant 0 : index
      %c0_37 = arith.constant 0 : index
      %51 = vector.load %arg9[%c0_36, %c0_37] : memref<128x1xf32, #tpu.memory_space<vmem>>, vector<128x1xf32>
      tpu.vector_store %arg9[%c0_36, %c0_37], %50 {strides = array<i32>} : memref<128x1xf32, #tpu.memory_space<vmem>>, vector<128x1xf32>,
    } else {
    }
    %c0_i32_22 = arith.constant 0 : i32
    %30 = arith.cmpi eq, %arg1, %c0_i32_22 : i32
    %31 = arith.extui %30 : i1 to i32
    %c0_i32_23 = arith.constant 0 : i32
    %32 = arith.cmpi ne, %31, %c0_i32_23 : i32
    scf.if %32 {
      %c0_24 = arith.constant 0 : index
      %c0_25 = arith.constant 0 : index
      %33 = vector.load %arg4[%c0_24, %c0_25] : memref<128x1xf32, #tpu.memory_space<vmem>>, vector<128x1xf32>
      %c0_26 = arith.constant 0 : index
      %c0_27 = arith.constant 0 : index
      %34 = vector.load %arg9[%c0_26, %c0_27] : memref<128x1xf32, #tpu.memory_space<vmem>>, vector<128x1xf32>
      %35 = arith.mulf %33, %34 : vector<128x1xf32>
      %c0_28 = arith.constant 0 : index
      %c0_29 = arith.constant 0 : index
      %36 = vector.load %arg10[%c0_28, %c0_29] : memref<1x1xf32, #tpu.memory_space<vmem>>, vector<1x1xf32>
      %37 = vector.broadcast %36 : vector<1x1xf32> to vector<128x1xf32>
      %38 = arith.subf %37, %33 : vector<128x1xf32>
      %39 = arith.mulf %33, %38 : vector<128x1xf32>
      %c0_30 = arith.constant 0 : index
      %c0_31 = arith.constant 0 : index
      %40 = vector.load %arg8[%c0_30, %c0_31] : memref<128x1xf32, #tpu.memory_space<vmem>>, vector<128x1xf32>
      %cst_32 = arith.constant 9.99999996E-13 : f32
      %41 = vector.broadcast %cst_32 : f32 to vector<128x1xf32>
      %42 = arith.addf %40, %41 : vector<128x1xf32>
      %43 = math.log %42 : vector<128x1xf32>
      %44 = arith.mulf %39, %43 : vector<128x1xf32>
      %45 = arith.subf %35, %44 : vector<128x1xf32>
      %cst_33 = arith.constant 0.000000e+00 : f32
      %46 = vector.broadcast %cst_33 : f32 to vector<128x1xf32>
      %47 = arith.subf %46, %45 : vector<128x1xf32>
      %cst_34 = arith.constant 9.99999996E-13 : f32
      %48 = vector.broadcast %cst_34 : f32 to vector<128x1xf32>
      %49 = arith.addf %39, %48 : vector<128x1xf32>
      %50 = tpu.reciprocal %49 {approx = true} : vector<128x1xf32> -> vector<128x1xf32>
      %51 = arith.mulf %47, %50 : vector<128x1xf32>
      %c0_35 = arith.constant 0 : index
      %c0_36 = arith.constant 0 : index
      %52 = vector.load %arg6[%c0_35, %c0_36] : memref<128x1xf32, #tpu.memory_space<vmem>>, vector<128x1xf32>
      tpu.vector_store %arg6[%c0_35, %c0_36], %51 {strides = array<i32>} : memref<128x1xf32, #tpu.memory_space<vmem>>, vector<128x1xf32>,
    } else {
    }
    return
  }
  func.func @transform_0(%arg0: i32, %arg1: i32) -> (i32, i32) {
    %c0_i32 = arith.constant 0 : i32
    %c0_i32_0 = arith.constant 0 : i32
    return %arg0, %c0_i32 : i32, i32
  }
  func.func @transform_1(%arg0: i32, %arg1: i32) -> (i32, i32, i32) {
    %c0_i32 = arith.constant 0 : i32
    %c0_i32_0 = arith.constant 0 : i32
    %c0_i32_1 = arith.constant 0 : i32
    %c0_i32_2 = arith.constant 0 : i32
    return %c0_i32, %c0_i32_0, %c0_i32_1 : i32, i32, i32
  }
  func.func @transform_2(%arg0: i32, %arg1: i32) -> (i32, i32) {
    %c0_i32 = arith.constant 0 : i32
    %c0_i32_0 = arith.constant 0 : i32
    return %arg0, %c0_i32 : i32, i32
  }
  func.func @transform_3(%arg0: i32, %arg1: i32) -> (i32, i32) {
    %c0_i32 = arith.constant 0 : i32
    %c0_i32_0 = arith.constant 0 : i32
    return %c0_i32, %arg1 : i32, i32
  }
  func.func @transform_4(%arg0: i32, %arg1: i32) -> (i32, i32) {
    %c0_i32 = arith.constant 0 : i32
    %c0_i32_0 = arith.constant 0 : i32
    return %arg0, %c0_i32 : i32, i32
  }
}

</mosaic_0001>

<bundles_post_ra>
// kernel: tpu_custom_call.1
= control target key start
LH: loop header
LB: loop body
LE: loop exit
PB: predicated region body
PF: predicated region fallthrough
CT: control target
= control target key end

     0   :  { %vm53_vm0 = vcmask 261120   ;;  %vm538_vm1 = vcmask 1040384   ;;  %v452_v54 = vlaneseq  ;;  %vm103_vm4 = vcmask 0   ;;  %s2079_s1 = inlined_call_operand.vmem [shape: f32[1,32,128], index: 1, kind: input, shape index: {}]   ;;  %s2080_s0 = inlined_call_operand.vmem [shape: f32[128,32], index: 0, kind: input, shape index: {}]   ;;  %s2081_s3 = inlined_call_operand.vmem [shape: f32[1,128], index: 3, kind: input, shape index: {}]   ;;  %s2082_s2 = inlined_call_operand.vmem [shape: f32[128,1], index: 2, kind: input, shape index: {}]   ;;  %s2083_s4 = inlined_call_operand.vmem [shape: f32[128,1], index: 4, kind: output, shape index: {}]  }
   0x1   :  { %v110_v0 = vld [vmem:[%s2079_s1 + $0x18] sm:$0xff]  ;;  %v109_v1 = vld [vmem:[%s2079_s1 + $0x10] sm:$0xff]  ;;  %v108_v2 = vld [vmem:[%s2079_s1 + $0x8] sm:$0xff]  ;;  %vm70_vm14 = vcmask 7168  }
   0x2   :  { %1115 = vmatprep.subr.mxu0 %v110_v0  ;;  %1147 = vmatprep.subr.mxu1 %v110_v0  ;;  %v21_v3 = vld [vmem:[%s2080_s0] sm:$0xff]  ;;  %v22_v4 = vld [vmem:[%s2080_s0 + $0x8] sm:$0xff]  ;;  %v23_v12 = vld [vmem:[%s2080_s0 + $0x10] sm:$0xff]  ;;  %v1376_v55 = vshrl.u32 %v452_v54, 7  ;;  %v1381_v57 = vand.u32 127, %v452_v54 }
   0x3   :  { %1116 = vmatpush3.msra.mxu0 %v110_v0  ;;  %1151 = vmatpush3.msra.mxu1 %v110_v0  ;;  %v107_v5 = vld [vmem:[%s2079_s1] sm:$0xff]  ;;  %v37_v6 = vmul.f32 14.285714, %v21_v3  ;;  %v38_v7 = vmul.f32 14.285714, %v22_v4  ;;  %v30_v9 = vld [vmem:[%s2080_s0 + $0x48] sm:$0xff] }
   0x4   :  { %v29_v8 = vld [vmem:[%s2080_s0 + $0x40] sm:$0xff]  ;;  %1117 = vmatprep.subr.mxu0 %v109_v1  ;;  %1148 = vmatprep.subr.mxu1 %v109_v1  ;;  %v46_v11 = vmul.f32 14.285714, %v30_v9  ;;  %v24_v13 = vld [vmem:[%s2080_s0 + $0x18] sm:$0xff]  ;;  %v39_v14 = vmul.f32 14.285714, %v23_v12  ;;  %vm568_vm3 = vcmp.eq.s32.totalorder %v1376_v55, %v1381_v57 }
   0x5   :  { %v45_v10 = vmul.f32 14.285714, %v29_v8  ;;  %1118 = vmatpush3.msra.mxu0 %v109_v1  ;;  %54 = vst.msk [vmem:[#allocation2] sm:$0xff] %vm53_vm0, %v37_v6  ;;  %1152 = vmatpush3.msra.mxu1 %v109_v1  ;;  %55 = vst.msk [vmem:[#allocation2 + $0x8] sm:$0xff] %vm53_vm0, %v38_v7  ;;  %v40_v15 = vmul.f32 14.285714, %v24_v13 }
   0x6   :  { %v31_v16 = vld [vmem:[%s2080_s0 + $0x50] sm:$0xff]  ;;  %v32_v17 = vld [vmem:[%s2080_s0 + $0x58] sm:$0xff]  ;;  %1119 = vmatprep.subr.mxu0 %v108_v2  ;;  %1149 = vmatprep.subr.mxu1 %v108_v2  ;;  %63 = vst.msk [vmem:[#allocation2 + $0x48] sm:$0xff] %vm53_vm0, %v46_v11  ;;  %v25_v20 = vld [vmem:[%s2080_s0 + $0x20] sm:$0xff]  ;;  %v1379_v56 = vadd.s32 8, %v1376_v55  ;;  %v454_v58 = vsub.s32 0, %v1376_v55 }
   0x7   :  { %62 = vst.msk [vmem:[#allocation2 + $0x40] sm:$0xff] %vm53_vm0, %v45_v10  ;;  %v47_v18 = vmul.f32 14.285714, %v31_v16  ;;  %v48_v19 = vmul.f32 14.285714, %v32_v17  ;;  %v26_v21 = vld [vmem:[%s2080_s0 + $0x28] sm:$0xff]  ;;  %1120 = vmatpush3.msra.mxu0 %v108_v2  ;;  %1153 = vmatpush3.msra.mxu1 %v108_v2 }
   0x8   :  { %56 = vst.msk [vmem:[#allocation2 + $0x10] sm:$0xff] %vm53_vm0, %v39_v14  ;;  %57 = vst.msk [vmem:[#allocation2 + $0x18] sm:$0xff] %vm53_vm0, %v40_v15  ;;  %v41_v22 = vmul.f32 14.285714, %v25_v20  ;;  %v42_v23 = vmul.f32 14.285714, %v26_v21  ;;  %1121 = vmatprep.subr.mxu0 %v107_v5  ;;  %1150 = vmatprep.subr.mxu1 %v107_v5  ;;  %vm569_vm2 = vcmp.eq.s32.totalorder %v1379_v56, %v1381_v57 }
   0x9   :  { %v33_v24 = vld [vmem:[%s2080_s0 + $0x60] sm:$0xff]  ;;  %v34_v25 = vld [vmem:[%s2080_s0 + $0x68] sm:$0xff]  ;;  %64 = vst.msk [vmem:[#allocation2 + $0x50] sm:$0xff] %vm53_vm0, %v47_v18  ;;  %65 = vst.msk [vmem:[#allocation2 + $0x58] sm:$0xff] %vm53_vm0, %v48_v19  ;;  %1122 = vmatpush3.msra.mxu0 %v107_v5  ;;  %1154 = vmatpush3.msra.mxu1 %v107_v5  ;;  %v1387_v59 = vadd.s32 88, %v1376_v55  ;;  %v1402_v0 = vadd.s32 80, %v1376_v55 }
   0xa   :  { %v49_v26 = vmul.f32 14.285714, %v33_v24  ;;  %v50_v27 = vmul.f32 14.285714, %v34_v25  ;;  %v27_v28 = vld [vmem:[%s2080_s0 + $0x30] sm:$0xff]  ;;  %v28_v29 = vld [vmem:[%s2080_s0 + $0x38] sm:$0xff] }
   0xb   :  { %58 = vst.msk [vmem:[#allocation2 + $0x20] sm:$0xff] %vm53_vm0, %v41_v22  ;;  %59 = vst.msk [vmem:[#allocation2 + $0x28] sm:$0xff] %vm53_vm0, %v42_v23  ;;  %v43_v30 = vmul.f32 14.285714, %v27_v28  ;;  %v44_v31 = vmul.f32 14.285714, %v28_v29  ;;  %vm579_vm5 = vcmp.eq.s32.totalorder %v1387_v59, %v1381_v57  ;;  %vm578_vm6 = vcmp.eq.s32.totalorder %v1402_v0, %v1381_v57 }
   0xc   :  { %v35_v32 = vld [vmem:[%s2080_s0 + $0x70] sm:$0xff]  ;;  %v36_v33 = vld [vmem:[%s2080_s0 + $0x78] sm:$0xff]  ;;  %66 = vst.msk [vmem:[#allocation2 + $0x60] sm:$0xff] %vm53_vm0, %v49_v26  ;;  %67 = vst.msk [vmem:[#allocation2 + $0x68] sm:$0xff] %vm53_vm0, %v50_v27  ;;  %v1253_v1 = vmov 0.0   ;;  %v1417_v5 = vadd.s32 104, %v1376_v55 }
   0xd   :  { %v51_v34 = vmul.f32 14.285714, %v35_v32  ;;  %v52_v35 = vmul.f32 14.285714, %v36_v33  ;;  %v353_v36 = vld [vmem:[%s2081_s3] sm:$0x1] }
   0xe   :  { %60 = vst.msk [vmem:[#allocation2 + $0x30] sm:$0xff] %vm53_vm0, %v43_v30  ;;  %61 = vst.msk [vmem:[#allocation2 + $0x38] sm:$0xff] %vm53_vm0, %v44_v31  ;;  %v539_v37 = vsel %vm538_vm1, %v353_v36, 0.0  ;;  %v111_v38 = vld [vmem:[#allocation2] sm:$0xff]  ;;  %v112_v39 = vld [vmem:[#allocation2 + $0x8] sm:$0xff]  ;;  %v1389_v60 = vrot.slane %v353_v36, %v454_v58  ;;  %v1424_v8 = vadd.s32 24, %v1376_v55  ;;  %vm581_vm7 = vcmp.eq.s32.totalorder %v1417_v5, %v1381_v57 }
   0xf   :  { %68 = vst.msk [vmem:[#allocation2 + $0x70] sm:$0xff] %vm53_vm0, %v51_v34  ;;  %69 = vst.msk [vmem:[#allocation2 + $0x78] sm:$0xff] %vm53_vm0, %v52_v35  ;;  %540 = vadd.xlane.f32.xlu0 %v539_v37  ;;  %1123 = vmatprep.mubr.msk.f32.mxu0 %vm53_vm0, %v111_v38  ;;  %v119_v40 = vld [vmem:[#allocation2 + $0x40] sm:$0xff]  ;;  %v120_v41 = vld [vmem:[#allocation2 + $0x48] sm:$0xff]  ;;  %v1431_v10 = vadd.s32 96, %v1376_v55  ;;  %v1440_v14 = vadd.s32 56, %v1376_v55 }
  0x10   :  { %1124 = vmatmul.mubr.msk.f32.vlgmr.msra.gmra.mxu0 %vm53_vm0, %v112_v39  ;;  %1135 = vmatprep.mubr.msk.f32.mxu1 %vm53_vm0, %v119_v40  ;;  %v113_v42 = vld [vmem:[#allocation2 + $0x10] sm:$0xff]  ;;  %v114_v43 = vld [vmem:[#allocation2 + $0x18] sm:$0xff]  ;;  %104 = vst.msk [vmem:[#allocation5] sm:$0x1] %vm103_vm4, %v1253_v1  ;;  %v1453_v17 = vadd.s32 120, %v1376_v55  ;;  %vm571_vm8 = vcmp.eq.s32.totalorder %v1424_v8, %v1381_v57  ;;  %v1458_v18 = vadd.s32 16, %v1376_v55 }
  0x11   :  { %1136 = vmatmul.mubr.msk.f32.vlgmr.msra.gmra.mxu1 %vm53_vm0, %v120_v41  ;;  %1126 = vmatprep.mubr.msk.f32.mxu0 %vm53_vm0, %v113_v42  ;;  %v121_v44 = vld [vmem:[#allocation2 + $0x50] sm:$0xff]  ;;  %v122_v45 = vld [vmem:[#allocation2 + $0x58] sm:$0xff]  ;;  %vm580_vm9 = vcmp.eq.s32.totalorder %v1431_v10, %v1381_v57  ;;  %v1473_v22 = vadd.s32 112, %v1376_v55  ;;  %vm575_vm10 = vcmp.eq.s32.totalorder %v1440_v14, %v1381_v57  ;;  %v1530_v37 = vadd.s32 40, %v1376_v55  ;;  %88 = vst.msk [vmem:[#allocation4 + $0x8] sm:$0xff] %vm70_vm14, %v1253_v1 }
  0x12   :  { %1138 = vmatprep.mubr.msk.f32.mxu1 %vm53_vm0, %v121_v44  ;;  %v115_v46 = vld [vmem:[#allocation2 + $0x20] sm:$0xff]  ;;  %v116_v48 = vld [vmem:[#allocation2 + $0x28] sm:$0xff]  ;;  %vm583_vm11 = vcmp.eq.s32.totalorder %v1453_v17, %v1381_v57  ;;  %vm570_vm12 = vcmp.eq.s32.totalorder %v1458_v18, %v1381_v57  ;;  %87 = vst.msk [vmem:[#allocation4] sm:$0xff] %vm70_vm14, %v1253_v1  ;;  %89 = vst.msk [vmem:[#allocation4 + $0x10] sm:$0xff] %vm70_vm14, %v1253_v1 }
  0x13   :  { %v123_v47 = vld [vmem:[#allocation2 + $0x60] sm:$0xff]  ;;  %v124_v49 = vld [vmem:[#allocation2 + $0x68] sm:$0xff]  ;;  %vm582_vm13 = vcmp.eq.s32.totalorder %v1473_v22, %v1381_v57  ;;  %90 = vst.msk [vmem:[#allocation4 + $0x18] sm:$0xff] %vm70_vm14, %v1253_v1  ;;  %91 = vst.msk [vmem:[#allocation4 + $0x20] sm:$0xff] %vm70_vm14, %v1253_v1  ;;  %vm573_vm15 = vcmp.eq.s32.totalorder %v1530_v37, %v1381_v57 }
  0x14   :  { %1127 = vmatmul.mubr.msk.f32.gmra.mxu0 %vm53_vm0, %v114_v43  ;;  %92 = vst.msk [vmem:[#allocation4 + $0x28] sm:$0xff] %vm70_vm14, %v1253_v1  ;;  %93 = vst.msk [vmem:[#allocation4 + $0x30] sm:$0xff] %vm70_vm14, %v1253_v1  ;;  %v1578_v43 = vadd.s32 32, %v1376_v55 }
  0x15   :  { %1139 = vmatmul.mubr.msk.f32.gmra.mxu1 %vm53_vm0, %v122_v45  ;;  %1129 = vmatprep.mubr.msk.f32.mxu0 %vm53_vm0, %v115_v46  ;;  %v117_v50 = vld [vmem:[#allocation2 + $0x30] sm:$0xff]  ;;  %v118_v52 = vld [vmem:[#allocation2 + $0x38] sm:$0xff]  ;;  %94 = vst.msk [vmem:[#allocation4 + $0x38] sm:$0xff] %vm70_vm14, %v1253_v1  ;;  %95 = vst.msk [vmem:[#allocation4 + $0x40] sm:$0xff] %vm70_vm14, %v1253_v1 }
  0x16   :  { %1141 = vmatprep.mubr.msk.f32.mxu1 %vm53_vm0, %v123_v47  ;;  %v125_v51 = vld [vmem:[#allocation2 + $0x70] sm:$0xff]  ;;  %v126_v53 = vld [vmem:[#allocation2 + $0x78] sm:$0xff]  ;;  %96 = vst.msk [vmem:[#allocation4 + $0x48] sm:$0xff] %vm70_vm14, %v1253_v1  ;;  %97 = vst.msk [vmem:[#allocation4 + $0x50] sm:$0xff] %vm70_vm14, %v1253_v1 }
  0x17   :  { %v537_v33 = vld [vmem:[#allocation5] sm:$0x1]  ;;  %98 = vst.msk [vmem:[#allocation4 + $0x58] sm:$0xff] %vm70_vm14, %v1253_v1  ;;  %99 = vst.msk [vmem:[#allocation4 + $0x60] sm:$0xff] %vm70_vm14, %v1253_v1 }
  0x18   :  { %1130 = vmatmul.mubr.msk.f32.gmra.mxu0 %vm53_vm0, %v116_v48  ;;  %100 = vst.msk [vmem:[#allocation4 + $0x68] sm:$0xff] %vm70_vm14, %v1253_v1  ;;  %101 = vst.msk [vmem:[#allocation4 + $0x70] sm:$0xff] %vm70_vm14, %v1253_v1  ;;  %v436_v22 = vld [vmem:[#allocation4 + $0x8] sm:$0xff] }
  0x19   :  { %1142 = vmatmul.mubr.msk.f32.gmra.mxu1 %vm53_vm0, %v124_v49  ;;  %1132 = vmatprep.mubr.msk.f32.mxu0 %vm53_vm0, %v117_v50  ;;  %102 = vst.msk [vmem:[#allocation4 + $0x78] sm:$0xff] %vm70_vm14, %v1253_v1 }
  0x1a   :  { %1144 = vmatprep.mubr.msk.f32.mxu1 %vm53_vm0, %v125_v51 }
  0x1c   :  { %1133 = vmatmul.mubr.msk.f32.gmra.mxu0 %vm53_vm0, %v118_v52 }
  0x1d   :  { %1145 = vmatmul.mubr.msk.f32.gmra.mxu1 %vm53_vm0, %v126_v53  ;;  %vm572_vm0 = vcmp.eq.s32.totalorder %v1578_v43, %v1381_v57 }
  0x98   :  { %v541_v39 = vpop.xlane.xlu0 %540 }
  0x99   :  { %v542_v40 = vadd.f32 %v541_v39, %v537_v33 }
  0x9b   :  { %544 = vst.msk [vmem:[#allocation5] sm:$0x1] %vm103_vm4, %v542_v40 }
  0xd0   :  { %v1391_v61 = vpop.f32.mrf.mxu0 }
  0xd1   :  { %v697_v62 = vsel %vm569_vm2, %v1391_v61, 0.0  ;;  %v1399_v63 = vpop.f32.mrf.mxu1  ;;  %v458_v6 = vmul.f32 %v1391_v61, %v1389_v60  ;;  %v323_v48 = vmul.f32 1.442695, %v1391_v61 }
  0xd2   :  { %714 = vadd.xlane.f32.xlu0 %v697_v62  ;;  %v1406_v2 = vpop.f32.mrf.mxu0  ;;  %v466_v12 = vmul.f32 %v1399_v63, %v1389_v60  ;;  %v339_v44 = vmul.f32 1.442695, %v1399_v63 }
  0xd3   :  { %v696_v3 = vsel %vm568_vm3, %v1406_v2, 0.0  ;;  %v1412_v4 = vpop.f32.mrf.mxu1  ;;  %v457_v11 = vmul.f32 %v1389_v60, %v1406_v2  ;;  %v321_v52 = vmul.f32 1.442695, %v1406_v2 }
  0xd4   :  { %712 = vadd.xlane.f32.xlu1 %v696_v3  ;;  %v1421_v7 = vpop.f32.mrf.mxu0  ;;  %v465_v23 = vmul.f32 %v1389_v60, %v1412_v4  ;;  %1157 = vpow2.f32 %v339_v44  ;;  %v337_v58 = vmul.f32 1.442695, %v1412_v4 }
  0xd5   :  { %v1426_v9 = vpop.f32.mrf.mxu1  ;;  %v699_v26 = vsel %vm571_vm8, %v1421_v7, 0.0  ;;  %v460_v36 = vmul.f32 %v1421_v7, %v1389_v60  ;;  %1159 = vpow2.f32 %v323_v48  ;;  %v327_v2 = vmul.f32 1.442695, %v1421_v7 }
  0xd6   :  { %475 = vadd.xlane.f32.xlu0 %v458_v6  ;;  %v1437_v13 = vpop.f32.mrf.mxu0  ;;  %v1446_v15 = vsel %vm579_vm5, %v1426_v9, 0.0  ;;  %v468_v42 = vmul.f32 %v1426_v9, %v1389_v60  ;;  %1161 = vpow2.f32 %v321_v52  ;;  %v1254_v6 = vmov -120.0  }
  0xd7   :  { %v1448_v16 = vpop.f32.mrf.mxu1  ;;  %v698_v34 = vsel %vm570_vm12, %v1437_v13, 0.0  ;;  %v459_v41 = vmul.f32 %v1389_v60, %v1437_v13  ;;  %1163 = vpow2.f32 %v337_v58  ;;  %80 = vst.msk [vmem:[#allocation3 + $0x48] sm:$0xff] %vm70_vm14, %v1254_v6  ;;  %71 = vst.msk [vmem:[#allocation3] sm:$0xff] %vm70_vm14, %v1254_v6  ;;  %v325_v33 = vmul.f32 1.442695, %v1437_v13 }
  0xd8   :  { %473 = vadd.xlane.f32.xlu1 %v457_v11  ;;  %v1460_v19 = vpop.f32.mrf.mxu0  ;;  %v1466_v20 = vsel %vm578_vm6, %v1448_v16, 0.0  ;;  %v467_v45 = vmul.f32 %v1389_v60, %v1448_v16  ;;  %72 = vst.msk [vmem:[#allocation3 + $0x8] sm:$0xff] %vm70_vm14, %v1254_v6  ;;  %73 = vst.msk [vmem:[#allocation3 + $0x10] sm:$0xff] %vm70_vm14, %v1254_v6  ;;  %1165 = vpow2.f32 %v327_v2  ;;  %v343_v11 = vmul.f32 1.442695, %v1426_v9  ;;  %v435_v2 = vld [vmem:[#allocation4] sm:$0xff] }
  0xd9   :  { %v1468_v21 = vpop.f32.mrf.mxu1  ;;  %v701_v46 = vsel %vm573_vm15, %v1460_v19, 0.0  ;;  %v462_v49 = vmul.f32 %v1460_v19, %v1389_v60  ;;  %74 = vst.msk [vmem:[#allocation3 + $0x18] sm:$0xff] %vm70_vm14, %v1254_v6  ;;  %75 = vst.msk [vmem:[#allocation3 + $0x20] sm:$0xff] %vm70_vm14, %v1254_v6  ;;  %v1646_v13 = vadd.s32 64, %v1376_v55 }
  0xda   :  { %491 = vadd.xlane.f32.xlu0 %v466_v12  ;;  %v1477_v24 = vpop.f32.mrf.mxu0  ;;  %v1485_v25 = vsel %vm581_vm7, %v1468_v21, 0.0  ;;  %v470_v51 = vmul.f32 %v1468_v21, %v1389_v60  ;;  %76 = vst.msk [vmem:[#allocation3 + $0x28] sm:$0xff] %vm70_vm14, %v1254_v6  ;;  %77 = vst.msk [vmem:[#allocation3 + $0x30] sm:$0xff] %vm70_vm14, %v1254_v6  ;;  %1167 = vpow2.f32 %v343_v11 }
  0xdb   :  { %v1491_v27 = vpop.f32.mrf.mxu1  ;;  %v700_v47 = vsel %vm572_vm0, %v1477_v24, 0.0  ;;  %v461_v50 = vmul.f32 %v1389_v60, %v1477_v24  ;;  %78 = vst.msk [vmem:[#allocation3 + $0x38] sm:$0xff] %vm70_vm14, %v1254_v6  ;;  %79 = vst.msk [vmem:[#allocation3 + $0x40] sm:$0xff] %vm70_vm14, %v1254_v6  ;;  %v329_v39 = vmul.f32 1.442695, %v1477_v24 }
  0xdc   :  { %489 = vadd.xlane.f32.xlu1 %v465_v23  ;;  %v1497_v28 = vpop.f32.mrf.mxu0  ;;  %v1503_v29 = vsel %vm580_vm9, %v1491_v27, 0.0  ;;  %v469_v53 = vmul.f32 %v1389_v60, %v1491_v27  ;;  %81 = vst.msk [vmem:[#allocation3 + $0x50] sm:$0xff] %vm70_vm14, %v1254_v6  ;;  %82 = vst.msk [vmem:[#allocation3 + $0x58] sm:$0xff] %vm70_vm14, %v1254_v6  ;;  %v341_v23 = vmul.f32 1.442695, %v1448_v16 }
  0xdd   :  { %v1505_v30 = vpop.f32.mrf.mxu1  ;;  %v1511_v31 = vsel %vm575_vm10, %v1497_v28, 0.0  ;;  %v464_v54 = vmul.f32 %v1497_v28, %v1389_v60  ;;  %83 = vst.msk [vmem:[#allocation3 + $0x60] sm:$0xff] %vm70_vm14, %v1254_v6  ;;  %84 = vst.msk [vmem:[#allocation3 + $0x68] sm:$0xff] %vm70_vm14, %v1254_v6  ;;  %v345_v44 = vmul.f32 1.442695, %v1491_v27 }
  0xde   :  { %718 = vadd.xlane.f32.xlu0 %v699_v26  ;;  %v1519_v32 = vsel %vm583_vm11, %v1505_v30, 0.0  ;;  %v472_v61 = vmul.f32 %v1505_v30, %v1389_v60  ;;  %v1608_v1 = vpop.f32.mrf.mxu0  ;;  %85 = vst.msk [vmem:[#allocation3 + $0x70] sm:$0xff] %vm70_vm14, %v1254_v6  ;;  %86 = vst.msk [vmem:[#allocation3 + $0x78] sm:$0xff] %vm70_vm14, %v1254_v6  ;;  %1169 = vpow2.f32 %v341_v23  ;;  %v347_v24 = vmul.f32 1.442695, %v1468_v21  ;;  %v443_v6 = vld [vmem:[#allocation4 + $0x40] sm:$0xff] }
  0xdf   :  { %v1525_v35 = vpop.f32.mrf.mxu1  ;;  %v463_v3 = vmul.f32 %v1389_v60, %v1608_v1  ;;  %1171 = vpow2.f32 %v325_v33  ;;  %v333_v8 = vmul.f32 1.442695, %v1608_v1  ;;  %v438_v33 = vld [vmem:[#allocation4 + $0x18] sm:$0xff] }
  0xe0   :  { %716 = vadd.xlane.f32.xlu1 %v698_v34  ;;  %v1536_v38 = vsel %vm582_vm13, %v1525_v35, 0.0  ;;  %v471_v12 = vmul.f32 %v1389_v60, %v1525_v35  ;;  %v1635_v34 = vadd.s32 72, %v1376_v55  ;;  %1173 = vpow2.f32 %v329_v39 }
  0xe1   :  { %v1158_v62 = vpop.eup %1157 }
  0xe2   :  { %479 = vadd.xlane.f32.xlu0 %v460_v36  ;;  %v1160_v7 = vpop.eup %1159  ;;  %vm577_vm1 = vcmp.eq.s32.totalorder %v1635_v34, %v1381_v57 }
  0xe3   :  { %v1162_v26 = vpop.eup %1161  ;;  %v617_v36 = vsel %vm569_vm2, %v1160_v7, 0.0  ;;  %v625_v60 = vsel %vm577_vm1, %v1158_v62, 0.0  ;;  %vm576_vm2 = vcmp.eq.s32.totalorder %v1646_v13, %v1381_v57  ;;  %v437_v13 = vld [vmem:[#allocation4 + $0x10] sm:$0xff] }
  0xe4   :  { %477 = vadd.xlane.f32.xlu1 %v459_v41  ;;  %v1164_v9 = vpop.eup %1163  ;;  %v616_v56 = vsel %vm568_vm3, %v1162_v26, 0.0  ;;  %v331_v41 = vmul.f32 1.442695, %v1460_v19  ;;  %v704_v14 = vsel %vm576_vm2, %v1412_v4, 0.0 }
  0xe5   :  { %v1166_v16 = vpop.eup %1165  ;;  %v624_v40 = vsel %vm576_vm2, %v1164_v9, 0.0 }
  0xe6   :  { %495 = vadd.xlane.f32.xlu0 %v468_v42  ;;  %1175 = vpow2.f32 %v331_v41 }
  0xe7   :  { %v1168_v42 = vpop.eup %1167  ;;  %1177 = vpow2.f32 %v345_v44  ;;  %v445_v44 = vld [vmem:[#allocation4 + $0x50] sm:$0xff] }
  0xe8   :  { %493 = vadd.xlane.f32.xlu1 %v467_v45  ;;  %1179 = vpow2.f32 %v347_v24  ;;  %v627_v27 = vsel %vm579_vm5, %v1168_v42, 0.0 }
  0xe9   :  { %1181 = vpow2.f32 %v333_v8 }
  0xea   :  { %722 = vadd.xlane.f32.xlu0 %v701_v46 }
  0xeb   :  { %v1170_v45 = vpop.eup %1169 }
  0xec   :  { %720 = vadd.xlane.f32.xlu1 %v700_v47  ;;  %v1172_v46 = vpop.eup %1171  ;;  %v619_v47 = vsel %vm571_vm8, %v1166_v16, 0.0  ;;  %v626_v21 = vsel %vm578_vm6, %v1170_v45, 0.0 }
  0xed   :  { %v618_v19 = vsel %vm570_vm12, %v1172_v46, 0.0  ;;  %v1174_v48 = vpop.eup %1173 }
  0xee   :  { %483 = vadd.xlane.f32.xlu0 %v462_v49  ;;  %v335_v49 = vmul.f32 1.442695, %v1497_v28  ;;  %v620_v52 = vsel %vm572_vm0, %v1174_v48, 0.0 }
  0xf0   :  { %481 = vadd.xlane.f32.xlu1 %v461_v50  ;;  %v349_v50 = vmul.f32 1.442695, %v1525_v35  ;;  %1183 = vpow2.f32 %v335_v49  ;;  %v440_v49 = vld [vmem:[#allocation4 + $0x28] sm:$0xff] }
  0xf2   :  { %499 = vadd.xlane.f32.xlu0 %v470_v51  ;;  %v351_v51 = vmul.f32 1.442695, %v1505_v30  ;;  %1185 = vpow2.f32 %v349_v50 }
  0xf3   :  { %v1176_v18 = vpop.eup %1175 }
  0xf4   :  { %497 = vadd.xlane.f32.xlu1 %v469_v53  ;;  %v1178_v59 = vpop.eup %1177  ;;  %1187 = vpow2.f32 %v351_v51  ;;  %v621_v28 = vsel %vm573_vm15, %v1176_v18, 0.0 }
  0xf5   :  { %v1180_v0 = vpop.eup %1179  ;;  %v628_v35 = vsel %vm580_vm9, %v1178_v59, 0.0 }
  0xf6   :  { %487 = vadd.xlane.f32.xlu0 %v464_v54  ;;  %v629_v30 = vsel %vm581_vm7, %v1180_v0, 0.0  ;;  %v1182_v53 = vpop.eup %1181  ;;  %v556_v54 = vadd.s32 48, %v1376_v55 }
  0xf8   :  { %388 = vadd.xlane.f32.xlu1 %v1158_v62  ;;  %vm574_vm3 = vcmp.eq.s32.totalorder %v556_v54, %v1381_v57  ;;  %v447_v54 = vld [vmem:[#allocation4 + $0x60] sm:$0xff] }
  0xf9   :  { %v702_v10 = vsel %vm574_vm3, %v1608_v1, 0.0  ;;  %v622_v5 = vsel %vm574_vm3, %v1182_v53, 0.0 }
  0xfa   :  { %503 = vadd.xlane.f32.xlu0 %v472_v61 }
  0xfc   :  { %485 = vadd.xlane.f32.xlu1 %v463_v3  ;;  %v444_v3 = vld [vmem:[#allocation4 + $0x48] sm:$0xff] }
  0xfd   :  { %v1184_v43 = vpop.eup %1183 }
  0xfe   :  { %372 = vadd.xlane.f32.xlu0 %v1160_v7  ;;  %v623_v61 = vsel %vm575_vm10, %v1184_v43, 0.0  ;;  %v1726_v7 = vld [vmem:[%s2082_s2] sm:$0xff] }
  0xff   :  { %v1186_v58 = vpop.eup %1185 }
 0x100   :  { %501 = vadd.xlane.f32.xlu1 %v471_v12  ;;  %v630_v55 = vsel %vm582_vm13, %v1186_v58, 0.0 }
 0x101   :  { %v1188_v37 = vpop.eup %1187 }
 0x102   :  { %370 = vadd.xlane.f32.xlu0 %v1162_v26  ;;  %v631_v62 = vsel %vm583_vm11, %v1188_v37, 0.0 }
 0x104   :  { %634 = vadd.xlane.f32.xlu1 %v617_v36 }
 0x106   :  { %386 = vadd.xlane.f32.xlu0 %v1164_v9 }
 0x108   :  { %650 = vadd.xlane.f32.xlu1 %v625_v60 }
 0x10a   :  { %632 = vadd.xlane.f32.xlu0 %v616_v56 }
 0x10c   :  { %376 = vadd.xlane.f32.xlu1 %v1166_v16 }
 0x10e   :  { %648 = vadd.xlane.f32.xlu0 %v624_v40  ;;  %v446_v40 = vld [vmem:[#allocation4 + $0x58] sm:$0xff] }
 0x110   :  { %392 = vadd.xlane.f32.xlu1 %v1168_v42 }
 0x112   :  { %390 = vadd.xlane.f32.xlu0 %v1170_v45 }
 0x114   :  { %638 = vadd.xlane.f32.xlu1 %v619_v47  ;;  %v1739_v47 = vld [vmem:[%s2082_s2 + $0x18] sm:$0xff] }
 0x116   :  { %636 = vadd.xlane.f32.xlu0 %v618_v19 }
 0x118   :  { %654 = vadd.xlane.f32.xlu1 %v627_v27 }
 0x11a   :  { %652 = vadd.xlane.f32.xlu0 %v626_v21  ;;  %v1746_v21 = vld [vmem:[%s2082_s2 + $0x10] sm:$0xff] }
 0x11c   :  { %374 = vadd.xlane.f32.xlu1 %v1172_v46 }
 0x11e   :  { %378 = vadd.xlane.f32.xlu0 %v1174_v48 }
 0x120   :  { %380 = vadd.xlane.f32.xlu1 %v1176_v18 }
 0x122   :  { %394 = vadd.xlane.f32.xlu0 %v1178_v59 }
 0x124   :  { %396 = vadd.xlane.f32.xlu1 %v1180_v0  ;;  %v439_v0 = vld [vmem:[#allocation4 + $0x20] sm:$0xff] }
 0x126   :  { %640 = vadd.xlane.f32.xlu0 %v620_v52 }
 0x128   :  { %642 = vadd.xlane.f32.xlu1 %v621_v28 }
 0x12a   :  { %656 = vadd.xlane.f32.xlu0 %v628_v35 }
 0x12c   :  { %658 = vadd.xlane.f32.xlu1 %v629_v30  ;;  %v448_v30 = vld [vmem:[#allocation4 + $0x68] sm:$0xff] }
 0x12e   :  { %382 = vadd.xlane.f32.xlu0 %v1182_v53 }
 0x130   :  { %384 = vadd.xlane.f32.xlu1 %v1184_v43 }
 0x132   :  { %398 = vadd.xlane.f32.xlu0 %v1186_v58 }
 0x134   :  { %400 = vadd.xlane.f32.xlu1 %v1188_v37 }
 0x136   :  { %726 = vadd.xlane.f32.xlu0 %v1511_v31  ;;  %v705_v31 = vsel %vm577_vm1, %v1399_v63, 0.0 }
 0x138   :  { %724 = vadd.xlane.f32.xlu1 %v702_v10  ;;  %v442_v10 = vld [vmem:[#allocation4 + $0x38] sm:$0xff] }
 0x13a   :  { %644 = vadd.xlane.f32.xlu0 %v622_v5 }
 0x13c   :  { %646 = vadd.xlane.f32.xlu1 %v623_v61  ;;  %v1757_v61 = vld [vmem:[%s2082_s2 + $0x28] sm:$0xff] }
 0x13e   :  { %660 = vadd.xlane.f32.xlu0 %v630_v55 }
 0x140   :  { %662 = vadd.xlane.f32.xlu1 %v631_v62  ;;  %v363_v62 = vld [vmem:[#allocation3 + $0x48] sm:$0xff] }
 0x142   :  { %730 = vadd.xlane.f32.xlu0 %v705_v31 }
 0x144   :  { %728 = vadd.xlane.f32.xlu1 %v704_v14 }
 0x146   :  { %734 = vadd.xlane.f32.xlu0 %v1446_v15 }
 0x148   :  { %732 = vadd.xlane.f32.xlu1 %v1466_v20 }
 0x14a   :  { %738 = vadd.xlane.f32.xlu0 %v1485_v25 }
 0x14c   :  { %736 = vadd.xlane.f32.xlu1 %v1503_v29  ;;  %v1720_v29 = vld [vmem:[%s2082_s2 + $0x8] sm:$0xff] }
 0x14e   :  { %742 = vadd.xlane.f32.xlu0 %v1519_v32 }
 0x150   :  { %740 = vadd.xlane.f32.xlu1 %v1536_v38 }
 0x15b   :  { %v715_v63 = vpop.xlane.xlu0 %714 }
 0x15c   :  { %v761_v12 = vmul.f32 %v715_v63, %v1720_v29  ;;  %v1764_v63 = vld [vmem:[%s2082_s2 + $0x20] sm:$0xff] }
 0x15d   :  { %v713_v17 = vpop.xlane.xlu1 %712 }
 0x15e   :  { %v760_v34 = vmul.f32 %v713_v17, %v1726_v7 }
 0x15f   :  { %v476_v1 = vpop.xlane.xlu0 %475 }
 0x160   :  { %v506_v57 = vadd.f32 %v476_v1, %v436_v22  ;;  %v450_v1 = vld [vmem:[#allocation4 + $0x78] sm:$0xff] }
 0x161   :  { %v474_v4 = vpop.xlane.xlu1 %473 }
 0x162   :  { %522 = vst.msk [vmem:[#allocation4 + $0x8] sm:$0xff] %vm70_vm14, %v506_v57  ;;  %v505_v15 = vadd.f32 %v474_v4, %v435_v2 }
 0x163   :  { %v492_v20 = vpop.xlane.xlu0 %491 }
 0x164   :  { %521 = vst.msk [vmem:[#allocation4] sm:$0xff] %vm70_vm14, %v505_v15  ;;  %v514_v25 = vadd.f32 %v492_v20, %v444_v3  ;;  %v441_v20 = vld [vmem:[#allocation4 + $0x30] sm:$0xff] }
 0x165   :  { %v490_v32 = vpop.xlane.xlu1 %489 }
 0x166   :  { %530 = vst.msk [vmem:[#allocation4 + $0x48] sm:$0xff] %vm70_vm14, %v514_v25  ;;  %v513_v38 = vadd.f32 %v490_v32, %v443_v6 }
 0x167   :  { %v719_v11 = vpop.xlane.xlu0 %718 }
 0x168   :  { %529 = vst.msk [vmem:[#allocation4 + $0x40] sm:$0xff] %vm70_vm14, %v513_v38  ;;  %v763_v27 = vmul.f32 %v719_v11, %v1739_v47  ;;  %v355_v38 = vld [vmem:[#allocation3 + $0x8] sm:$0xff] }
 0x169   :  { %v745_v23 = vld [vmem:[#allocation4 + $0x8] sm:$0xff]  ;;  %v717_v26 = vpop.xlane.xlu1 %716 }
 0x16a   :  { %v777_v36 = vsub.f32 %v745_v23, %v761_v12  ;;  %v762_v18 = vmul.f32 %v717_v26, %v1746_v21  ;;  %v449_v23 = vld [vmem:[#allocation4 + $0x70] sm:$0xff] }
 0x16b   :  { %v744_v9 = vld [vmem:[#allocation4] sm:$0xff]  ;;  %v480_v60 = vpop.xlane.xlu0 %479 }
 0x16c   :  { %793 = vst.msk [vmem:[#allocation4 + $0x8] sm:$0xff] %vm70_vm14, %v777_v36  ;;  %v776_v56 = vsub.f32 %v744_v9, %v760_v34  ;;  %v508_v16 = vadd.f32 %v480_v60, %v438_v33  ;;  %v354_v34 = vld [vmem:[#allocation3] sm:$0xff] }
 0x16d   :  { %v478_v39 = vpop.xlane.xlu1 %477 }
 0x16e   :  { %792 = vst.msk [vmem:[#allocation4] sm:$0xff] %vm70_vm14, %v776_v56  ;;  %524 = vst.msk [vmem:[#allocation4 + $0x18] sm:$0xff] %vm70_vm14, %v508_v16  ;;  %v507_v41 = vadd.f32 %v478_v39, %v437_v13  ;;  %v362_v56 = vld [vmem:[#allocation3 + $0x40] sm:$0xff] }
 0x16f   :  { %v496_v42 = vpop.xlane.xlu0 %495 }
 0x170   :  { %523 = vst.msk [vmem:[#allocation4 + $0x10] sm:$0xff] %vm70_vm14, %v507_v41  ;;  %v516_v45 = vadd.f32 %v496_v42, %v446_v40 }
 0x171   :  { %v494_v46 = vpop.xlane.xlu1 %493 }
 0x172   :  { %532 = vst.msk [vmem:[#allocation4 + $0x58] sm:$0xff] %vm70_vm14, %v516_v45  ;;  %v515_v24 = vadd.f32 %v494_v46, %v445_v44 }
 0x173   :  { %v723_v19 = vpop.xlane.xlu0 %722 }
 0x174   :  { %531 = vst.msk [vmem:[#allocation4 + $0x50] sm:$0xff] %vm70_vm14, %v515_v24  ;;  %v765_v31 = vmul.f32 %v723_v19, %v1757_v61  ;;  %v357_v24 = vld [vmem:[#allocation3 + $0x18] sm:$0xff] }
 0x175   :  { %v747_v8 = vld [vmem:[#allocation4 + $0x18] sm:$0xff]  ;;  %v721_v48 = vpop.xlane.xlu1 %720 }
 0x176   :  { %v779_v50 = vsub.f32 %v747_v8, %v763_v27  ;;  %v764_v2 = vmul.f32 %v721_v48, %v1764_v63 }
 0x177   :  { %v746_v59 = vld [vmem:[#allocation4 + $0x10] sm:$0xff]  ;;  %v484_v51 = vpop.xlane.xlu0 %483 }
 0x178   :  { %795 = vst.msk [vmem:[#allocation4 + $0x18] sm:$0xff] %vm70_vm14, %v779_v50  ;;  %v778_v52 = vsub.f32 %v746_v59, %v762_v18  ;;  %v510_v28 = vadd.f32 %v484_v51, %v440_v49  ;;  %v1779_v49 = vld [vmem:[#allocation5] ss:$0 sm:$0xff]  ;;  %v365_v50 = vld [vmem:[#allocation3 + $0x58] sm:$0xff] }
 0x179   :  { %v482_v35 = vpop.xlane.xlu1 %481 }
 0x17a   :  { %794 = vst.msk [vmem:[#allocation4 + $0x10] sm:$0xff] %vm70_vm14, %v778_v52  ;;  %526 = vst.msk [vmem:[#allocation4 + $0x28] sm:$0xff] %vm70_vm14, %v510_v28  ;;  %v509_v53 = vadd.f32 %v482_v35, %v439_v0  ;;  %v364_v0 = vld [vmem:[#allocation3 + $0x50] sm:$0xff]  ;;  %v867_v52 = vsub.f32 %v1779_v49, %v1720_v29 }
 0x17b   :  { %v500_v43 = vpop.xlane.xlu0 %499 }
 0x17c   :  { %525 = vst.msk [vmem:[#allocation4 + $0x20] sm:$0xff] %vm70_vm14, %v509_v53  ;;  %v518_v58 = vadd.f32 %v500_v43, %v448_v30 }
 0x17d   :  { %v498_v37 = vpop.xlane.xlu1 %497 }
 0x17e   :  { %534 = vst.msk [vmem:[#allocation4 + $0x68] sm:$0xff] %vm70_vm14, %v518_v58  ;;  %v517_v5 = vadd.f32 %v498_v37, %v447_v54  ;;  %v866_v37 = vsub.f32 %v1779_v49, %v1726_v7 }
 0x17f   :  { %v488_v55 = vpop.xlane.xlu0 %487 }
 0x180   :  { %533 = vst.msk [vmem:[#allocation4 + $0x60] sm:$0xff] %vm70_vm14, %v517_v5  ;;  %v512_v14 = vadd.f32 %v488_v55, %v442_v10  ;;  %v883_v10 = vmul.f32 %v867_v52, %v1720_v29 }
 0x181   :  { %v749_v17 = vld [vmem:[#allocation4 + $0x28] sm:$0xff]  ;;  %v389_v22 = vpop.xlane.xlu1 %388 }
 0x182   :  { %v781_v57 = vsub.f32 %v749_v17, %v765_v31  ;;  %528 = vst.msk [vmem:[#allocation4 + $0x38] sm:$0xff] %vm70_vm14, %v512_v14  ;;  %v411_v4 = vadd.f32 %v389_v22, %v363_v62  ;;  %v1011_v22 = vadd.f32 1e-12, %v883_v10 }
 0x183   :  { %v748_v3 = vld [vmem:[#allocation4 + $0x20] sm:$0xff]  ;;  %v504_v15 = vpop.xlane.xlu0 %503 }
 0x184   :  { %797 = vst.msk [vmem:[#allocation4 + $0x28] sm:$0xff] %vm70_vm14, %v781_v57  ;;  %v780_v6 = vsub.f32 %v748_v3, %v764_v2  ;;  %428 = vst.msk [vmem:[#allocation3 + $0x48] sm:$0xff] %vm70_vm14, %v411_v4  ;;  %v520_v25 = vadd.f32 %v504_v15, %v450_v1  ;;  %v882_v1 = vmul.f32 %v866_v37, %v1726_v7  ;;  %v356_v4 = vld [vmem:[#allocation3 + $0x10] sm:$0xff] }
 0x185   :  { %v486_v32 = vpop.xlane.xlu1 %485 }
 0x186   :  { %796 = vst.msk [vmem:[#allocation4 + $0x20] sm:$0xff] %vm70_vm14, %v780_v6  ;;  %536 = vst.msk [vmem:[#allocation4 + $0x78] sm:$0xff] %vm70_vm14, %v520_v25  ;;  %v511_v11 = vadd.f32 %v486_v32, %v441_v20  ;;  %v358_v6 = vld [vmem:[#allocation3 + $0x20] sm:$0xff]  ;;  %v1010_v25 = vadd.f32 1e-12, %v882_v1 }
 0x187   :  { %v373_v12 = vpop.xlane.xlu0 %372 }
 0x188   :  { %527 = vst.msk [vmem:[#allocation4 + $0x30] sm:$0xff] %vm70_vm14, %v511_v11  ;;  %v403_v26 = vadd.f32 %v373_v12, %v355_v38  ;;  %v359_v12 = vld [vmem:[#allocation3 + $0x28] sm:$0xff] }
 0x189   :  { %v502_v33 = vpop.xlane.xlu1 %501 }
 0x18a   :  { %420 = vst.msk [vmem:[#allocation3 + $0x8] sm:$0xff] %vm70_vm14, %v403_v26  ;;  %v519_v36 = vadd.f32 %v502_v33, %v449_v23  ;;  %v869_v23 = vsub.f32 %v1779_v49, %v1739_v47 }
 0x18b   :  { %v371_v9 = vpop.xlane.xlu0 %370  ;;  %v609_v41 = vld [vmem:[#allocation3 + $0x48] sm:$0xff] }
 0x18c   :  { %535 = vst.msk [vmem:[#allocation4 + $0x70] sm:$0xff] %vm70_vm14, %v519_v36  ;;  %v402_v60 = vadd.f32 %v371_v9, %v354_v34  ;;  %v366_v36 = vld [vmem:[#allocation3 + $0x60] sm:$0xff] }
 0x18d   :  { %v635_v13 = vpop.xlane.xlu1 %634 }
 0x18e   :  { %419 = vst.msk [vmem:[#allocation3] sm:$0xff] %vm70_vm14, %v402_v60 }
 0x18f   :  { %v387_v16 = vpop.xlane.xlu0 %386 }
 0x190   :  { %v410_v39 = vadd.f32 %v387_v16, %v362_v56  ;;  %v828_v56 = vld [vmem:[#allocation4 + $0x8] sm:$0xff] }
 0x191   :  { %v601_v40 = vld [vmem:[#allocation3 + $0x8] sm:$0xff]  ;;  %v651_v42 = vpop.xlane.xlu1 %650 }
 0x192   :  { %v665_v44 = vsub.f32 %v601_v40, %v635_v13  ;;  %427 = vst.msk [vmem:[#allocation3 + $0x40] sm:$0xff] %vm70_vm14, %v410_v39  ;;  %v673_v45 = vsub.f32 %v609_v41, %v651_v42  ;;  %v367_v39 = vld [vmem:[#allocation3 + $0x68] sm:$0xff]  ;;  %v1802_v41 = vmul.f32 %v869_v23, %v1739_v47 }
 0x193   :  { %v633_v46 = vpop.xlane.xlu0 %632 }
 0x194   :  { %681 = vst.msk [vmem:[#allocation3 + $0x8] sm:$0xff] %vm70_vm14, %v665_v44  ;;  %689 = vst.msk [vmem:[#allocation3 + $0x48] sm:$0xff] %vm70_vm14, %v673_v45  ;;  %v844_v45 = vmul.f32 %v828_v56, %v1720_v29 }
 0x195   :  { %v600_v19 = vld [vmem:[#allocation3] sm:$0xff]  ;;  %v377_v27 = vpop.xlane.xlu1 %376 }
 0x196   :  { %v664_v8 = vsub.f32 %v600_v19, %v633_v46  ;;  %v405_v48 = vadd.f32 %v377_v27, %v357_v24  ;;  %v827_v27 = vld [vmem:[#allocation4] sm:$0xff] }
 0x197   :  { %v649_v18 = vpop.xlane.xlu0 %648  ;;  %v843_v29 = vmul.f32 %v827_v27, %v1726_v7  ;;  %v360_v7 = vld [vmem:[#allocation3 + $0x30] sm:$0xff] }
 0x198   :  { %680 = vst.msk [vmem:[#allocation3] sm:$0xff] %vm70_vm14, %v664_v8  ;;  %422 = vst.msk [vmem:[#allocation3 + $0x18] sm:$0xff] %vm70_vm14, %v405_v48 }
 0x199   :  { %v608_v59 = vld [vmem:[#allocation3 + $0x40] sm:$0xff]  ;;  %v393_v51 = vpop.xlane.xlu1 %392 }
 0x19a   :  { %v672_v28 = vsub.f32 %v608_v59, %v649_v18  ;;  %v413_v35 = vadd.f32 %v393_v51, %v365_v50  ;;  %v1013_v59 = vadd.f32 1e-12, %v1802_v41 }
 0x19b   :  { %v899_v30 = vld [vmem:[#allocation3 + $0x8] sm:$0xff]  ;;  %v391_v53 = vpop.xlane.xlu0 %390 }
 0x19c   :  { %v915_v43 = vadd.f32 1e-12, %v899_v30  ;;  %688 = vst.msk [vmem:[#allocation3 + $0x40] sm:$0xff] %vm70_vm14, %v672_v28  ;;  %430 = vst.msk [vmem:[#allocation3 + $0x58] sm:$0xff] %vm70_vm14, %v413_v35  ;;  %v412_v54 = vadd.f32 %v391_v53, %v364_v0  ;;  %v907_v27 = vld [vmem:[#allocation3 + $0x48] sm:$0xff] }
 0x19d   :  { %v639_v58 = vpop.xlane.xlu1 %638 }
 0x19e   :  { %1189 = vlog2.f32 %v915_v43  ;;  %429 = vst.msk [vmem:[#allocation3 + $0x50] sm:$0xff] %vm70_vm14, %v412_v54 }
 0x19f   :  { %v898_v5 = vld [vmem:[#allocation3] sm:$0xff]  ;;  %v603_v55 = vld [vmem:[#allocation3 + $0x18] sm:$0xff]  ;;  %v1791_v62 = vpop.xlane.xlu0 %636 }
 0x1a0   :  { %v914_v31 = vadd.f32 1e-12, %v898_v5  ;;  %v667_v14 = vsub.f32 %v603_v55, %v639_v58  ;;  %v868_v5 = vsub.f32 %v1779_v49, %v1746_v21 }
 0x1a1   :  { %v655_v17 = vpop.xlane.xlu1 %654 }
 0x1a2   :  { %1191 = vlog2.f32 %v914_v31  ;;  %683 = vst.msk [vmem:[#allocation3 + $0x18] sm:$0xff] %vm70_vm14, %v667_v14 }
 0x1a3   :  { %v611_v2 = vld [vmem:[#allocation3 + $0x58] sm:$0xff]  ;;  %v653_v57 = vpop.xlane.xlu0 %652  ;;  %1193 = vrcp.f32 %v1011_v22  ;;  %v871_v22 = vsub.f32 %v1779_v49, %v1757_v61 }
 0x1a4   :  { %v675_v3 = vsub.f32 %v611_v2, %v655_v17  ;;  %1195 = vrcp.f32 %v1010_v25 }
 0x1a5   :  { %v610_v15 = vld [vmem:[#allocation3 + $0x50] sm:$0xff]  ;;  %v375_v20 = vpop.xlane.xlu1 %374 }
 0x1a6   :  { %691 = vst.msk [vmem:[#allocation3 + $0x58] sm:$0xff] %vm70_vm14, %v675_v3  ;;  %v674_v32 = vsub.f32 %v610_v15, %v653_v57  ;;  %v404_v38 = vadd.f32 %v375_v20, %v356_v4  ;;  %v361_v4 = vld [vmem:[#allocation3 + $0x38] sm:$0xff]  ;;  %v1827_v3 = vld [vmem:[%s2082_s2 + $0x30] sm:$0xff] }
 0x1a7   :  { %v379_v11 = vpop.xlane.xlu0 %378 }
 0x1a8   :  { %690 = vst.msk [vmem:[#allocation3 + $0x50] sm:$0xff] %vm70_vm14, %v674_v32  ;;  %421 = vst.msk [vmem:[#allocation3 + $0x10] sm:$0xff] %vm70_vm14, %v404_v38  ;;  %v406_v26 = vadd.f32 %v379_v11, %v358_v6  ;;  %v830_v32 = vld [vmem:[#allocation4 + $0x18] sm:$0xff]  ;;  %v1831_v38 = vmul.f32 %v868_v5, %v1746_v21 }
 0x1a9   :  { %v901_v33 = vld [vmem:[#allocation3 + $0x18] sm:$0xff]  ;;  %v381_v34 = vpop.xlane.xlu1 %380 }
 0x1aa   :  { %v917_v9 = vadd.f32 1e-12, %v901_v33  ;;  %423 = vst.msk [vmem:[#allocation3 + $0x20] sm:$0xff] %vm70_vm14, %v406_v26  ;;  %v407_v60 = vadd.f32 %v381_v34, %v359_v12  ;;  %v368_v12 = vld [vmem:[#allocation3 + $0x70] sm:$0xff]  ;;  %v872_v34 = vsub.f32 %v1779_v49, %v1827_v3 }
 0x1ab   :  { %v1190_v13 = vpop.eup %1189  ;;  %v395_v16 = vpop.xlane.xlu0 %394 }
 0x1ac   :  { %v933_v40 = vmul.f32 0.6931472, %v1190_v13  ;;  %1197 = vlog2.f32 %v917_v9  ;;  %424 = vst.msk [vmem:[#allocation3 + $0x28] sm:$0xff] %vm70_vm14, %v407_v60  ;;  %v414_v42 = vadd.f32 %v395_v16, %v366_v36  ;;  %v1845_v13 = vmul.f32 %v871_v22, %v1757_v61  ;;  %v1850_v16 = vld [vmem:[%s2082_s2 + $0x38] sm:$0xff] }
 0x1ad   :  { %v397_v44 = vpop.xlane.xlu1 %396  ;;  %1199 = vrcp.f32 %v1013_v59  ;;  %v1878_v59 = vld [vmem:[%s2082_s2 + $0x50] sm:$0xff] }
 0x1ae   :  { %v963_v46 = vmul.f32 %v933_v40, %v883_v10  ;;  %431 = vst.msk [vmem:[#allocation3 + $0x60] sm:$0xff] %vm70_vm14, %v414_v42  ;;  %v415_v24 = vadd.f32 %v397_v44, %v367_v39  ;;  %v846_v39 = vmul.f32 %v830_v32, %v1739_v47 }
 0x1af   :  { %v1192_v19 = vpop.eup %1191  ;;  %v602_v8 = vld [vmem:[#allocation3 + $0x10] sm:$0xff]  ;;  %v641_v48 = vpop.xlane.xlu0 %640 }
 0x1b0   :  { %v979_v18 = vsub.f32 %v844_v45, %v963_v46  ;;  %v931_v50 = vmul.f32 0.6931472, %v1192_v19  ;;  %432 = vst.msk [vmem:[#allocation3 + $0x68] sm:$0xff] %vm70_vm14, %v415_v24  ;;  %v666_v51 = vsub.f32 %v602_v8, %v1791_v62  ;;  %v1194_v53 = vpop.eup %1193  ;;  %v369_v45 = vld [vmem:[#allocation3 + $0x78] sm:$0xff]  ;;  %v1858_v46 = vld [vmem:[%s2082_s2 + $0x48] sm:$0xff]  ;;  %v1863_v24 = vld [vmem:[%s2082_s2 + $0x40] sm:$0xff] }
 0x1b1   :  { %v604_v0 = vld [vmem:[#allocation3 + $0x20] sm:$0xff]  ;;  %v643_v52 = vpop.xlane.xlu1 %642  ;;  %v1196_v17 = vpop.eup %1195  ;;  %v1012_v19 = vadd.f32 1e-12, %v1831_v38 }
 0x1b2   :  { %v995_v28 = vsub.f32 0.0, %v979_v18  ;;  %v962_v35 = vmul.f32 %v931_v50, %v882_v1  ;;  %v668_v30 = vsub.f32 %v604_v0, %v641_v48  ;;  %682 = vst.msk [vmem:[#allocation3 + $0x10] sm:$0xff] %vm70_vm14, %v666_v51  ;;  %v870_v1 = vsub.f32 %v1779_v49, %v1764_v63  ;;  %v1873_v50 = vld [vmem:[%s2082_s2 + $0x58] sm:$0xff] }
 0x1b3   :  { %v605_v43 = vld [vmem:[#allocation3 + $0x28] sm:$0xff]  ;;  %v657_v54 = vpop.xlane.xlu0 %656  ;;  %v1868_v18 = vmul.f32 %v872_v34, %v1827_v3  ;;  %v873_v0 = vsub.f32 %v1779_v49, %v1850_v16  ;;  %v877_v5 = vsub.f32 %v1779_v49, %v1873_v50 }
 0x1b4   :  { %v1043_v58 = vmul.f32 %v1194_v53, %v995_v28  ;;  %v978_v37 = vsub.f32 %v843_v29, %v962_v35  ;;  %684 = vst.msk [vmem:[#allocation3 + $0x20] sm:$0xff] %vm70_vm14, %v668_v30  ;;  %v669_v10 = vsub.f32 %v605_v43, %v643_v52  ;;  %v1842_v9 = vmul.f32 %v870_v1, %v1764_v63  ;;  %v906_v35 = vld [vmem:[#allocation3 + $0x40] sm:$0xff] }
 0x1b5   :  { %v612_v55 = vld [vmem:[#allocation3 + $0x60] sm:$0xff]  ;;  %v659_v62 = vpop.xlane.xlu1 %658  ;;  %v875_v29 = vsub.f32 %v1779_v49, %v1858_v46  ;;  %v874_v28 = vsub.f32 %v1779_v49, %v1863_v24  ;;  %v1015_v43 = vadd.f32 1e-12, %v1845_v13 }
 0x1b6   :  { %1059 = vst.msk [vmem:[%s2083_s4 + $0x8] sm:$0xff] %vm70_vm14, %v1043_v58  ;;  %v994_v31 = vsub.f32 0.0, %v978_v37  ;;  %685 = vst.msk [vmem:[#allocation3 + $0x28] sm:$0xff] %vm70_vm14, %v669_v10  ;;  %v676_v14 = vsub.f32 %v612_v55, %v657_v54  ;;  %v1014_v53 = vadd.f32 1e-12, %v1842_v9  ;;  %v876_v55 = vsub.f32 %v1779_v49, %v1878_v59  ;;  %v1904_v1 = vld [vmem:[%s2082_s2 + $0x60] sm:$0xff] }
 0x1b7   :  { %v613_v2 = vld [vmem:[#allocation3 + $0x68] sm:$0xff]  ;;  %v383_v57 = vpop.xlane.xlu0 %382  ;;  %v923_v58 = vadd.f32 1e-12, %v907_v27  ;;  %v1910_v32 = vmul.f32 %v874_v28, %v1863_v24 }
 0x1b8   :  { %v1042_v15 = vmul.f32 %v1196_v17, %v994_v31  ;;  %692 = vst.msk [vmem:[#allocation3 + $0x60] sm:$0xff] %vm70_vm14, %v676_v14  ;;  %v677_v20 = vsub.f32 %v613_v2, %v659_v62  ;;  %v408_v6 = vadd.f32 %v383_v57, %v360_v7  ;;  %v1897_v62 = vld [vmem:[%s2082_s2 + $0x68] sm:$0xff]  ;;  %v909_v31 = vld [vmem:[#allocation3 + $0x58] sm:$0xff]  ;;  %v1016_v17 = vadd.f32 1e-12, %v1868_v18  ;;  %v908_v57 = vld [vmem:[#allocation3 + $0x50] sm:$0xff] }
 0x1b9   :  { %v1198_v25 = vpop.eup %1197  ;;  %v385_v11 = vpop.xlane.xlu1 %384  ;;  %v900_v26 = vld [vmem:[#allocation3 + $0x10] sm:$0xff]  ;;  %v751_v14 = vld [vmem:[#allocation4 + $0x38] sm:$0xff]  ;;  %v922_v2 = vadd.f32 1e-12, %v906_v35 }
 0x1ba   :  { %1058 = vst.msk [vmem:[%s2083_s4] sm:$0xff] %vm70_vm14, %v1042_v15  ;;  %v937_v23 = vmul.f32 0.6931472, %v1198_v25  ;;  %693 = vst.msk [vmem:[#allocation3 + $0x68] sm:$0xff] %vm70_vm14, %v677_v20  ;;  %v409_v33 = vadd.f32 %v385_v11, %v361_v4  ;;  %v916_v36 = vadd.f32 1e-12, %v900_v26  ;;  %v1200_v54 = vpop.eup %1199  ;;  %v1907_v25 = vmul.f32 %v875_v29, %v1858_v46 }
 0x1bb   :  { %425 = vst.msk [vmem:[#allocation3 + $0x30] sm:$0xff] %vm70_vm14, %v408_v6  ;;  %v902_v60 = vld [vmem:[#allocation3 + $0x20] sm:$0xff]  ;;  %v399_v56 = vpop.xlane.xlu0 %398  ;;  %v750_v15 = vld [vmem:[#allocation4 + $0x30] sm:$0xff]  ;;  %v925_v26 = vadd.f32 1e-12, %v909_v31  ;;  %v1949_v29 = vmul.f32 %v873_v0, %v1850_v16 }
 0x1bc   :  { %v965_v40 = vmul.f32 %v937_v23, %v1802_v41  ;;  %v918_v42 = vadd.f32 1e-12, %v902_v60  ;;  %426 = vst.msk [vmem:[#allocation3 + $0x38] sm:$0xff] %vm70_vm14, %v409_v33  ;;  %v416_v44 = vadd.f32 %v399_v56, %v368_v12  ;;  %1201 = vlog2.f32 %v916_v36 }
 0x1bd   :  { %v903_v47 = vld [vmem:[#allocation3 + $0x28] sm:$0xff]  ;;  %v401_v41 = vpop.xlane.xlu1 %400  ;;  %v879_v23 = vsub.f32 %v1779_v49, %v1897_v62  ;;  %v1920_v60 = vmul.f32 %v877_v5, %v1873_v50  ;;  %v1923_v56 = vmul.f32 %v876_v55, %v1878_v59 }
 0x1be   :  { %v981_v8 = vsub.f32 %v846_v39, %v965_v40  ;;  %1203 = vlog2.f32 %v918_v42  ;;  %v919_v48 = vadd.f32 1e-12, %v903_v47  ;;  %433 = vst.msk [vmem:[#allocation3 + $0x70] sm:$0xff] %vm70_vm14, %v416_v44  ;;  %v417_v51 = vadd.f32 %v401_v41, %v369_v45 }
 0x1bf   :  { %v727_v52 = vpop.xlane.xlu0 %726  ;;  %v924_v39 = vadd.f32 1e-12, %v908_v57  ;;  %v878_v42 = vsub.f32 %v1779_v49, %v1904_v1  ;;  %v910_v44 = vld [vmem:[#allocation3 + $0x60] sm:$0xff]  ;;  %v1019_v47 = vadd.f32 1e-12, %v1907_v25 }
 0x1c0   :  { %v997_v30 = vsub.f32 0.0, %v981_v8  ;;  %1205 = vlog2.f32 %v919_v48  ;;  %434 = vst.msk [vmem:[#allocation3 + $0x78] sm:$0xff] %vm70_vm14, %v417_v51  ;;  %v767_v37 = vmul.f32 %v727_v52, %v1850_v16  ;;  %v1018_v41 = vadd.f32 1e-12, %v1910_v32  ;;  %v1938_v51 = vld [vmem:[%s2082_s2 + $0x78] sm:$0xff]  ;;  %v1943_v52 = vld [vmem:[%s2082_s2 + $0x70] sm:$0xff] }
 0x1c1   :  { %v725_v10 = vpop.xlane.xlu1 %724  ;;  %1207 = vrcp.f32 %v1012_v19  ;;  %v911_v33 = vld [vmem:[#allocation3 + $0x68] sm:$0xff]  ;;  %v1933_v48 = vmul.f32 %v879_v23, %v1897_v62  ;;  %v1959_v5 = vmul.f32 %v878_v42, %v1904_v1  ;;  %v881_v31 = vsub.f32 %v1779_v49, %v1938_v51 }
 0x1c2   :  { %v1045_v7 = vmul.f32 %v1200_v54, %v997_v30  ;;  %v766_v22 = vmul.f32 %v725_v10, %v1827_v3  ;;  %v783_v4 = vsub.f32 %v751_v14, %v767_v37  ;;  %v606_v20 = vld [vmem:[#allocation3 + $0x30] sm:$0xff]  ;;  %1209 = vrcp.f32 %v1014_v53 }
 0x1c3   :  { %v645_v6 = vpop.xlane.xlu0 %644  ;;  %1211 = vlog2.f32 %v923_v58  ;;  %v607_v34 = vld [vmem:[#allocation3 + $0x38] sm:$0xff]  ;;  %v927_v27 = vadd.f32 1e-12, %v911_v33  ;;  %v1952_v30 = vadd.f32 1e-12, %v1920_v60  ;;  %v829_v54 = vld [vmem:[#allocation4 + $0x10] sm:$0xff]  ;;  %v880_v14 = vsub.f32 %v1779_v49, %v1943_v52 }
 0x1c4   :  { %1061 = vst.msk [vmem:[%s2083_s4 + $0x18] sm:$0xff] %vm70_vm14, %v1045_v7  ;;  %v782_v11 = vsub.f32 %v750_v15, %v766_v22  ;;  %v670_v12 = vsub.f32 %v606_v20, %v645_v6  ;;  %799 = vst.msk [vmem:[#allocation4 + $0x38] sm:$0xff] %vm70_vm14, %v783_v4  ;;  %1213 = vrcp.f32 %v1015_v43  ;;  %v1955_v53 = vadd.f32 1e-12, %v1923_v56  ;;  %v831_v58 = vld [vmem:[#allocation4 + $0x20] sm:$0xff]  ;;  %v832_v15 = vld [vmem:[#allocation4 + $0x28] sm:$0xff] }
 0x1c5   :  { %v647_v36 = vpop.xlane.xlu1 %646  ;;  %1215 = vlog2.f32 %v922_v2  ;;  %v614_v45 = vld [vmem:[#allocation3 + $0x70] sm:$0xff]  ;;  %v926_v37 = vadd.f32 1e-12, %v910_v44  ;;  %v1968_v2 = vadd.f32 1e-12, %v1933_v48  ;;  %v845_v4 = vmul.f32 %v829_v54, %v1746_v21  ;;  %v753_v33 = vld [vmem:[#allocation4 + $0x48] sm:$0xff] }
 0x1c6   :  { %798 = vst.msk [vmem:[#allocation4 + $0x30] sm:$0xff] %vm70_vm14, %v782_v11  ;;  %686 = vst.msk [vmem:[#allocation3 + $0x30] sm:$0xff] %vm70_vm14, %v670_v12  ;;  %v671_v40 = vsub.f32 %v607_v34, %v647_v36  ;;  %1217 = vrcp.f32 %v1016_v17  ;;  %v847_v20 = vmul.f32 %v831_v58, %v1764_v63  ;;  %v1976_v63 = vmul.f32 %v881_v31, %v1938_v51 }
 0x1c7   :  { %v661_v19 = vpop.xlane.xlu0 %660  ;;  %1219 = vlog2.f32 %v925_v26  ;;  %v615_v28 = vld [vmem:[#allocation3 + $0x78] sm:$0xff] }
 0x1c8   :  { %687 = vst.msk [vmem:[#allocation3 + $0x38] sm:$0xff] %vm70_vm14, %v671_v40  ;;  %v678_v8 = vsub.f32 %v614_v45, %v661_v19  ;;  %1221 = vlog2.f32 %v924_v39 }
 0x1c9   :  { %v663_v35 = vpop.xlane.xlu1 %662  ;;  %v1202_v43 = vpop.eup %1201  ;;  %1223 = vrcp.f32 %v1019_v47 }
 0x1ca   :  { %694 = vst.msk [vmem:[#allocation3 + $0x70] sm:$0xff] %vm70_vm14, %v678_v8  ;;  %v679_v10 = vsub.f32 %v615_v28, %v663_v35  ;;  %v935_v55 = vmul.f32 0.6931472, %v1202_v43  ;;  %1225 = vlog2.f32 %v927_v27 }
 0x1cb   :  { %v1204_v0 = vpop.eup %1203  ;;  %v731_v7 = vpop.xlane.xlu0 %730  ;;  %1227 = vrcp.f32 %v1018_v41 }
 0x1cc   :  { %v939_v17 = vmul.f32 0.6931472, %v1204_v0  ;;  %695 = vst.msk [vmem:[#allocation3 + $0x78] sm:$0xff] %vm70_vm14, %v679_v10  ;;  %v769_v22 = vmul.f32 %v731_v7, %v1858_v46  ;;  %v964_v6 = vmul.f32 %v935_v55, %v1831_v38  ;;  %1229 = vlog2.f32 %v926_v37 }
 0x1cd   :  { %v1206_v57 = vpop.eup %1205  ;;  %v904_v11 = vld [vmem:[#allocation3 + $0x30] sm:$0xff]  ;;  %v729_v49 = vpop.xlane.xlu1 %728  ;;  %v848_v38 = vmul.f32 %v832_v15, %v1757_v61  ;;  %v755_v61 = vld [vmem:[#allocation4 + $0x58] sm:$0xff]  ;;  %v1983_v10 = vmul.f32 %v880_v14, %v1943_v52 }
 0x1ce   :  { %v966_v12 = vmul.f32 %v939_v17, %v1842_v9  ;;  %v941_v23 = vmul.f32 0.6931472, %v1206_v57  ;;  %v920_v26 = vadd.f32 1e-12, %v904_v11  ;;  %v1208_v34 = vpop.eup %1207  ;;  %v980_v36 = vsub.f32 %v845_v4, %v964_v6  ;;  %v752_v9 = vld [vmem:[#allocation4 + $0x40] sm:$0xff] }
 0x1cf   :  { %v905_v39 = vld [vmem:[#allocation3 + $0x38] sm:$0xff]  ;;  %v785_v40 = vsub.f32 %v753_v33, %v769_v22  ;;  %v768_v21 = vmul.f32 %v729_v49, %v1863_v24  ;;  %v735_v42 = vpop.xlane.xlu0 %734  ;;  %v1210_v19 = vpop.eup %1209  ;;  %v757_v33 = vld [vmem:[#allocation4 + $0x68] sm:$0xff] }
 0x1d0   :  { %v982_v44 = vsub.f32 %v847_v20, %v966_v12  ;;  %v967_v45 = vmul.f32 %v941_v23, %v1845_v13  ;;  %1231 = vlog2.f32 %v920_v26  ;;  %v996_v47 = vsub.f32 0.0, %v980_v36  ;;  %v1212_v43 = vpop.eup %1211  ;;  %v754_v20 = vld [vmem:[#allocation4 + $0x50] sm:$0xff] }
 0x1d1   :  { %v921_v41 = vadd.f32 1e-12, %v905_v39  ;;  %v912_v27 = vld [vmem:[#allocation3 + $0x70] sm:$0xff]  ;;  %801 = vst.msk [vmem:[#allocation4 + $0x48] sm:$0xff] %vm70_vm14, %v785_v40  ;;  %v784_v8 = vsub.f32 %v752_v9, %v768_v21  ;;  %v771_v28 = vmul.f32 %v735_v42, %v1873_v50  ;;  %v733_v35 = vpop.xlane.xlu1 %732  ;;  %v1214_v13 = vpop.eup %1213  ;;  %v949_v14 = vmul.f32 0.6931472, %v1212_v43 }
 0x1d2   :  { %v998_v54 = vsub.f32 0.0, %v982_v44  ;;  %v983_v58 = vsub.f32 %v848_v38, %v967_v45  ;;  %v928_v37 = vadd.f32 1e-12, %v912_v27  ;;  %v1044_v0 = vmul.f32 %v1208_v34, %v996_v47  ;;  %v1216_v22 = vpop.eup %1215  ;;  %v756_v42 = vld [vmem:[#allocation4 + $0x60] sm:$0xff] }
 0x1d3   :  { %1233 = vlog2.f32 %v921_v41  ;;  %v913_v55 = vld [vmem:[#allocation3 + $0x78] sm:$0xff]  ;;  %800 = vst.msk [vmem:[#allocation4 + $0x40] sm:$0xff] %vm70_vm14, %v784_v8  ;;  %v787_v7 = vsub.f32 %v755_v61, %v771_v28  ;;  %v770_v31 = vmul.f32 %v733_v35, %v1878_v59  ;;  %v739_v17 = vpop.xlane.xlu0 %738  ;;  %v1987_v6 = vpop.eup %1217  ;;  %v1022_v34 = vadd.f32 1e-12, %v1959_v5 }
 0x1d4   :  { %v1046_v57 = vmul.f32 %v1210_v19, %v998_v54  ;;  %v999_v4 = vsub.f32 0.0, %v983_v58  ;;  %1235 = vlog2.f32 %v928_v37  ;;  %v929_v15 = vadd.f32 1e-12, %v913_v55  ;;  %1060 = vst.msk [vmem:[%s2083_s4 + $0x10] sm:$0xff] %vm70_vm14, %v1044_v0  ;;  %v1220_v23 = vpop.eup %1219  ;;  %v759_v35 = vld [vmem:[#allocation4 + $0x78] sm:$0xff]  ;;  %v758_v55 = vld [vmem:[#allocation4 + $0x70] sm:$0xff] }
 0x1d5   :  { %1237 = vrcp.f32 %v1952_v30  ;;  %803 = vst.msk [vmem:[#allocation4 + $0x58] sm:$0xff] %vm70_vm14, %v787_v7  ;;  %v786_v11 = vsub.f32 %v754_v20, %v770_v31  ;;  %v773_v49 = vmul.f32 %v739_v17, %v1897_v62  ;;  %v737_v12 = vpop.xlane.xlu1 %736  ;;  %v1222_v30 = vpop.eup %1221  ;;  %v947_v39 = vmul.f32 0.6931472, %v1216_v22 }
 0x1d6   :  { %1062 = vst.msk [vmem:[%s2083_s4 + $0x20] sm:$0xff] %vm70_vm14, %v1046_v57  ;;  %v1047_v26 = vmul.f32 %v1214_v13, %v999_v4  ;;  %1239 = vlog2.f32 %v929_v15  ;;  %v772_v36 = vmul.f32 %v737_v12, %v1904_v1  ;;  %v1017_v40 = vadd.f32 1e-12, %v1949_v29  ;;  %v1224_v44 = vpop.eup %1223  ;;  %v834_v57 = vld [vmem:[#allocation4 + $0x38] sm:$0xff]  ;;  %v833_v4 = vld [vmem:[#allocation4 + $0x30] sm:$0xff] }
 0x1d7   :  { %1241 = vrcp.f32 %v1955_v53  ;;  %802 = vst.msk [vmem:[#allocation4 + $0x50] sm:$0xff] %vm70_vm14, %v786_v11  ;;  %v789_v21 = vsub.f32 %v757_v33, %v773_v49  ;;  %v743_v38 = vpop.xlane.xlu0 %742  ;;  %v1025_v19 = vadd.f32 1e-12, %v1976_v63  ;;  %v1024_v41 = vadd.f32 1e-12, %v1983_v10  ;;  %v1226_v53 = vpop.eup %1225 }
 0x1d8   :  { %1063 = vst.msk [vmem:[%s2083_s4 + $0x28] sm:$0xff] %vm70_vm14, %v1047_v26  ;;  %v836_v45 = vld [vmem:[#allocation4 + $0x48] sm:$0xff]  ;;  %v788_v9 = vsub.f32 %v756_v42, %v772_v36  ;;  %v775_v47 = vmul.f32 %v743_v38, %v1938_v51  ;;  %v953_v27 = vmul.f32 0.6931472, %v1220_v23  ;;  %v971_v8 = vmul.f32 %v949_v14, %v1907_v25  ;;  %v1228_v54 = vpop.eup %1227 }
 0x1d9   :  { %v852_v28 = vmul.f32 %v836_v45, %v1858_v46  ;;  %1243 = vrcp.f32 %v1968_v2  ;;  %805 = vst.msk [vmem:[#allocation4 + $0x68] sm:$0xff] %vm70_vm14, %v789_v21  ;;  %v741_v43 = vpop.xlane.xlu1 %740  ;;  %v951_v58 = vmul.f32 0.6931472, %v1222_v30  ;;  %v1230_v0 = vpop.eup %1229  ;;  %v970_v46 = vmul.f32 %v947_v39, %v1910_v32 }
 0x1da   :  { %v835_v37 = vld [vmem:[#allocation4 + $0x40] sm:$0xff]  ;;  %1245 = vrcp.f32 %v1022_v34  ;;  %804 = vst.msk [vmem:[#allocation4 + $0x60] sm:$0xff] %vm70_vm14, %v788_v9  ;;  %v791_v61 = vsub.f32 %v759_v35, %v775_v47  ;;  %v774_v13 = vmul.f32 %v741_v43, %v1943_v52  ;;  %v957_v7 = vmul.f32 0.6931472, %v1226_v53 }
 0x1db   :  { %1247 = vrcp.f32 %v1017_v40  ;;  %v987_v25 = vsub.f32 %v852_v28, %v971_v8  ;;  %v851_v2 = vmul.f32 %v835_v37, %v1863_v24  ;;  %v973_v14 = vmul.f32 %v953_v27, %v1920_v60 }
 0x1dc   :  { %v838_v31 = vld [vmem:[#allocation4 + $0x58] sm:$0xff]  ;;  %1249 = vrcp.f32 %v1025_v19  ;;  %807 = vst.msk [vmem:[#allocation4 + $0x78] sm:$0xff] %vm70_vm14, %v791_v61  ;;  %v790_v17 = vsub.f32 %v758_v55, %v774_v13  ;;  %v955_v49 = vmul.f32 0.6931472, %v1230_v0  ;;  %v972_v24 = vmul.f32 %v951_v58, %v1923_v56 }
 0x1dd   :  { %v1232_v22 = vpop.eup %1231  ;;  %v1003_v15 = vsub.f32 0.0, %v987_v25  ;;  %v986_v20 = vsub.f32 %v851_v2, %v970_v46  ;;  %v854_v11 = vmul.f32 %v838_v31, %v1873_v50  ;;  %1251 = vrcp.f32 %v1024_v41 }
 0x1de   :  { %v943_v32 = vmul.f32 0.6931472, %v1232_v22  ;;  %v837_v12 = vld [vmem:[#allocation4 + $0x50] sm:$0xff]  ;;  %806 = vst.msk [vmem:[#allocation4 + $0x70] sm:$0xff] %vm70_vm14, %v790_v17  ;;  %v850_v30 = vmul.f32 %v834_v57, %v1850_v16  ;;  %v849_v60 = vmul.f32 %v833_v4, %v1827_v3  ;;  %v975_v39 = vmul.f32 %v957_v7, %v1933_v48 }
 0x1df   :  { %v1051_v23 = vmul.f32 %v1224_v44, %v1003_v15  ;;  %v1002_v26 = vsub.f32 0.0, %v986_v20  ;;  %v989_v33 = vsub.f32 %v854_v11, %v973_v14  ;;  %v853_v34 = vmul.f32 %v837_v12, %v1878_v59 }
 0x1e0   :  { %v1234_v36 = vpop.eup %1233  ;;  %v968_v50 = vmul.f32 %v943_v32, %v1868_v18  ;;  %v840_v40 = vld [vmem:[#allocation4 + $0x68] sm:$0xff]  ;;  %v974_v18 = vmul.f32 %v955_v49, %v1959_v5 }
 0x1e1   :  { %v1236_v56 = vpop.eup %1235  ;;  %v945_v21 = vmul.f32 0.6931472, %v1234_v36  ;;  %1067 = vst.msk [vmem:[%s2083_s4 + $0x48] sm:$0xff] %vm70_vm14, %v1051_v23  ;;  %v1050_v42 = vmul.f32 %v1228_v54, %v1002_v26  ;;  %v1005_v38 = vsub.f32 0.0, %v989_v33  ;;  %v988_v59 = vsub.f32 %v853_v34, %v972_v24  ;;  %v839_v44 = vld [vmem:[#allocation4 + $0x60] sm:$0xff] }
 0x1e2   :  { %v1238_v45 = vpop.eup %1237  ;;  %v984_v16 = vsub.f32 %v849_v60, %v968_v50  ;;  %v856_v3 = vmul.f32 %v840_v40, %v1897_v62  ;;  %v855_v48 = vmul.f32 %v839_v44, %v1904_v1  ;;  %v959_v47 = vmul.f32 0.6931472, %v1236_v56 }
 0x1e3   :  { %v1240_v9 = vpop.eup %1239  ;;  %v969_v19 = vmul.f32 %v945_v21, %v1949_v29  ;;  %1066 = vst.msk [vmem:[%s2083_s4 + $0x40] sm:$0xff] %vm70_vm14, %v1050_v42  ;;  %v1053_v41 = vmul.f32 %v1238_v45, %v1005_v38  ;;  %v1004_v53 = vsub.f32 0.0, %v988_v59  ;;  %v842_v27 = vld [vmem:[#allocation4 + $0x78] sm:$0xff] }
 0x1e4   :  { %v1242_v8 = vpop.eup %1241  ;;  %v1000_v28 = vsub.f32 0.0, %v984_v16  ;;  %v961_v35 = vmul.f32 0.6931472, %v1240_v9  ;;  %v991_v62 = vsub.f32 %v856_v3, %v975_v39  ;;  %v990_v43 = vsub.f32 %v855_v48, %v974_v18 }
 0x1e5   :  { %v985_v5 = vsub.f32 %v850_v30, %v969_v19  ;;  %1069 = vst.msk [vmem:[%s2083_s4 + $0x58] sm:$0xff] %vm70_vm14, %v1053_v41  ;;  %v1052_v1 = vmul.f32 %v1242_v8, %v1004_v53  ;;  %v858_v29 = vmul.f32 %v842_v27, %v1938_v51  ;;  %v841_v54 = vld [vmem:[#allocation4 + $0x70] sm:$0xff]  ;;  %v976_v55 = vmul.f32 %v959_v47, %v1983_v10 }
 0x1e6   :  { %v1244_v58 = vpop.eup %1243  ;;  %v1048_v37 = vmul.f32 %v1987_v6, %v1000_v28  ;;  %v1007_v61 = vsub.f32 0.0, %v991_v62  ;;  %v1006_v13 = vsub.f32 0.0, %v990_v43  ;;  %v977_v0 = vmul.f32 %v961_v35, %v1976_v63 }
 0x1e7   :  { %v1246_v25 = vpop.eup %1245  ;;  %v1001_v46 = vsub.f32 0.0, %v985_v5  ;;  %1068 = vst.msk [vmem:[%s2083_s4 + $0x50] sm:$0xff] %vm70_vm14, %v1052_v1  ;;  %v857_v2 = vmul.f32 %v841_v54, %v1943_v52 }
 0x1e8   :  { %v1248_v51 = vpop.eup %1247  ;;  %1064 = vst.msk [vmem:[%s2083_s4 + $0x30] sm:$0xff] %vm70_vm14, %v1048_v37  ;;  %v1055_v6 = vmul.f32 %v1244_v58, %v1007_v61  ;;  %v1054_v7 = vmul.f32 %v1246_v25, %v1006_v13  ;;  %v993_v63 = vsub.f32 %v858_v29, %v977_v0 }
 0x1e9   :  { %v1250_v31 = vpop.eup %1249  ;;  %v1049_v17 = vmul.f32 %v1248_v51, %v1001_v46  ;;  %v992_v22 = vsub.f32 %v857_v2, %v976_v55 }
 0x1ea   :  { %1071 = vst.msk [vmem:[%s2083_s4 + $0x68] sm:$0xff] %vm70_vm14, %v1055_v6  ;;  %1070 = vst.msk [vmem:[%s2083_s4 + $0x60] sm:$0xff] %vm70_vm14, %v1054_v7  ;;  %v1009_v52 = vsub.f32 0.0, %v993_v63  ;;  %v1252_v10 = vpop.eup %1251 }
 0x1eb   :  { %1065 = vst.msk [vmem:[%s2083_s4 + $0x38] sm:$0xff] %vm70_vm14, %v1049_v17  ;;  %v1008_v57 = vsub.f32 0.0, %v992_v22 }
 0x1ec   :  { %v1057_v4 = vmul.f32 %v1250_v31, %v1009_v52 }
 0x1ed   :  { %v1056_v15 = vmul.f32 %v1252_v10, %v1008_v57 }
 0x1ee   :  { %1073 = vst.msk [vmem:[%s2083_s4 + $0x78] sm:$0xff] %vm70_vm14, %v1057_v4 }
 0x1ef   :  { %1072 = vst.msk [vmem:[%s2083_s4 + $0x70] sm:$0xff] %vm70_vm14, %v1056_v15 }

</bundles_post_ra>
